<compile_context>
chip_gen: v5e
topology: v5e:2x2
jax: 0.10.0
libtpu: 0.0.40
codegen_flags: <defaults>
</compile_context>

<pallas_src>
import math
from functools import partial

import numpy as np
import jax
import jax.numpy as jnp
from jax import lax
from jax.experimental import pallas as pl
from jax.experimental.pallas import tpu as pltpu

_HIGHEST = jax.lax.Precision.HIGHEST


def _attention_block_kernel(x_ref, rmask_ref, bmask_ref, wqkv_ref, bqkv_ref,
                            wproj_ref, bproj_ref, o_ref, qkv_scr, a_scr,
                            *, num_heads, num_groups, eps):
    # x_ref: (1, C, T) block; weights are constant-index full-array blocks.
    x = x_ref[0].astype(jnp.float32)                       # (C, T)
    C, T = x.shape
    H = num_heads
    ch = C // H

    # ---- GroupNorm32: single-pass stats via tiny (G,C)/(C,G) mask matmuls ---
    inv_n = 1.0 / float((C // num_groups) * T)
    s1 = jnp.sum(x, axis=-1, keepdims=True)                # (C, 1)
    s2 = jnp.sum(x * x, axis=-1, keepdims=True)            # (C, 1)
    rmask = rmask_ref[...]                                 # (G, C) 0/1
    bmask = bmask_ref[...]                                 # (C, G) 0/1
    gmean = jnp.dot(rmask, s1, precision=_HIGHEST,
                    preferred_element_type=jnp.float32) * inv_n      # (G, 1)
    gex2 = jnp.dot(rmask, s2, precision=_HIGHEST,
                   preferred_element_type=jnp.float32) * inv_n       # (G, 1)
    gvar = jnp.maximum(gex2 - gmean * gmean, 0.0)          # clamp single-pass var
    grstd = lax.rsqrt(gvar + eps)
    mean_c = jnp.dot(bmask, gmean, precision=_HIGHEST,
                     preferred_element_type=jnp.float32)             # (C, 1)
    rstd_c = jnp.dot(bmask, grstd, precision=_HIGHEST,
                     preferred_element_type=jnp.float32)             # (C, 1)
    # gamma/beta are folded into w_qkv/b_qkv host-side -> plain normalization.
    xn_bf = ((x - mean_c) * rstd_c).astype(jnp.bfloat16)

    # ---- QKV projection: 1x1 conv == channel matmul (bf16 MXU, f32 accum) ---
    qkv = jnp.dot(wqkv_ref[...], xn_bf, preferred_element_type=jnp.float32)
    qkv_scr[...] = qkv + bqkv_ref[...]                     # (3C, T) f32 scratch

    # ---- QKVAttentionLegacy: rolled head loop, outputs written to scratch ---
    def head_body(h, carry):
        base = pl.multiple_of(h * (3 * ch), ch)
        qh = qkv_scr[pl.ds(base, ch), :].astype(jnp.bfloat16)          # (ch, T)
        kh = qkv_scr[pl.ds(base + ch, ch), :].astype(jnp.bfloat16)     # (ch, T)
        vh = qkv_scr[pl.ds(base + 2 * ch, ch), :].astype(jnp.bfloat16) # (ch, T)
        # scores[t, s] = sum_c q[c, t] * k[c, s] (q/k scale already folded in)
        s = lax.dot_general(qh, kh, (((0,), (0,)), ((), ())),
                            preferred_element_type=jnp.float32)        # (T, T)
        s = s - jnp.max(s, axis=-1, keepdims=True)
        p = jnp.exp(s)                                                  # f32 EUP
        inv_denom = pl.reciprocal(jnp.sum(p, axis=-1, keepdims=True), approx=True)
        p_bf = (p * inv_denom).astype(jnp.bfloat16)
        # a[c, t] = sum_s p[t, s] * v[c, s]
        ah = lax.dot_general(vh, p_bf, (((1,), (1,)), ((), ())),
                             preferred_element_type=jnp.float32)        # (ch, T)
        a_scr[pl.ds(pl.multiple_of(h * ch, ch), ch), :] = ah
        return carry

    lax.fori_loop(0, H, head_body, 0)

    # ---- proj_out + residual --------------------------------------------------
    hproj = jnp.dot(wproj_ref[...], a_scr[...].astype(jnp.bfloat16),
                    preferred_element_type=jnp.float32)                 # (C, T)
    o_ref[0] = (x + hproj + bproj_ref[...]).astype(o_ref.dtype)


def attention_block(x, gamma, beta, w_qkv, b_qkv, w_proj, b_proj, *,
                    num_heads=1, num_groups=32, eps=1e-5):
    """Fused AttentionBlock forward.  x: (B, C, *spatial)."""
    B, C = x.shape[0], x.shape[1]
    T = int(np.prod(x.shape[2:]))
    assert C % num_groups == 0, "GroupNorm32 requires C % num_groups == 0"
    assert C % num_heads == 0
    assert gamma.shape == (C,) and beta.shape == (C,)
    assert w_qkv.shape == (3 * C, C) and b_qkv.shape == (3 * C,)
    assert w_proj.shape == (C, C) and b_proj.shape == (C,)
    ch = C // num_heads

    x3 = x.reshape(B, C, T)
    f32 = jnp.float32

    # --- host-side weight folding (exact, one-time) --------------------------
    gamma_f = gamma.astype(f32)
    beta_f = beta.astype(f32)
    w_qkv_f = w_qkv.astype(f32)
    b_qkv_f = b_qkv.astype(f32)
    # Conv(gamma*xn + beta) + b  ==  (W*gamma) xn + (W@beta + b)
    w_fold = w_qkv_f * gamma_f[None, :]
    b_fold = b_qkv_f + jnp.dot(w_qkv_f, beta_f, precision=_HIGHEST)
    # Fold the ch**-0.25 q/k scaling into the q/k row blocks (legacy layout
    # is [head][q(ch) | k(ch) | v(ch)] along the output-channel axis).
    scale = 1.0 / math.sqrt(math.sqrt(ch))
    row_in_head = jnp.arange(3 * C, dtype=jnp.int32) % (3 * ch)
    qk_scale = jnp.where(row_in_head < 2 * ch, scale, 1.0).astype(f32)
    w_fold = w_fold * qk_scale[:, None]
    b_fold = b_fold * qk_scale

    wqkv_bf = w_fold.astype(jnp.bfloat16)                  # bf16 MXU operands
    wproj_bf = w_proj.astype(jnp.bfloat16)
    bqkv2 = b_fold.reshape(3 * C, 1).astype(f32)           # biases stay f32
    bproj2 = b_proj.reshape(C, 1).astype(f32)

    # --- GroupNorm reduce/broadcast masks: (G,C) and (C,G) -------------------
    gs = C // num_groups
    gid = jnp.arange(C, dtype=jnp.int32) // gs
    rmask = (jnp.arange(num_groups, dtype=jnp.int32)[:, None]
             == gid[None, :]).astype(f32)                  # (G, C)
    bmask = jnp.transpose(rmask)                           # (C, G)

    # --- VMEM budget: <= ~80% of physical so v7x (64 MiB) keeps headroom -----
    itemsize = int(jnp.dtype(x.dtype).itemsize)
    est = (2 * 2 * C * T * itemsize                        # double-buffered io tiles
           + 2 * 2 * 4 * C * C                             # bf16 weights (x2 bufs)
           + 2 * 4 * (2 * num_groups * C + 4 * C)          # masks + biases (f32)
           + 4 * 4 * C * T                                 # qkv + a scratches (f32)
           + 4 * (3 * C * T + 2 * T * T))                  # xn / qkv / scores temps
    try:
        cap = int(getattr(pltpu.get_tpu_info(), "vmem_capacity_bytes",
                          64 * 1024 * 1024))
    except Exception:
        cap = 64 * 1024 * 1024
    budget = int(0.8 * cap)
    vmem_limit = int(min(max(2 * est, 32 * 1024 * 1024), budget))

    # --- cost estimate (helps XLA schedule around the custom call) -----------
    flops = B * (2 * (3 * C) * C * T + 2 * C * C * T + 4 * C * T * T)
    transcendentals = B * (num_heads * T * T + num_heads * T + C)
    bytes_accessed = (2 * B * C * T * itemsize + 8 * C * C
                      + 2 * num_groups * C * 4 + 16 * C)
    cost = pl.CostEstimate(flops=flops, transcendentals=transcendentals,
                           bytes_accessed=bytes_accessed)

    kernel = partial(_attention_block_kernel, num_heads=num_heads,
                     num_groups=num_groups, eps=eps)

    out = pl.pallas_call(
        kernel,
        out_shape=jax.ShapeDtypeStruct((B, C, T), x.dtype),
        grid_spec=pltpu.PrefetchScalarGridSpec(
            num_scalar_prefetch=0,
            grid=(B,),
            in_specs=[
                pl.BlockSpec((1, C, T), lambda b: (b, 0, 0)),          # x
                pl.BlockSpec((num_groups, C), lambda b: (0, 0)),       # reduce mask
                pl.BlockSpec((C, num_groups), lambda b: (0, 0)),       # bcast mask
                pl.BlockSpec((3 * C, C), lambda b: (0, 0)),            # w_qkv (bf16)
                pl.BlockSpec((3 * C, 1), lambda b: (0, 0)),            # b_qkv
                pl.BlockSpec((C, C), lambda b: (0, 0)),                # w_proj (bf16)
                pl.BlockSpec((C, 1), lambda b: (0, 0)),                # b_proj
            ],
            out_specs=pl.BlockSpec((1, C, T), lambda b: (b, 0, 0)),    # lane-dense (C,T)
            scratch_shapes=[pltpu.VMEM((3 * C, T), jnp.float32),       # qkv
                            pltpu.VMEM((C, T), jnp.float32)],          # head outputs
        ),
        compiler_params=pltpu.CompilerParams(
            dimension_semantics=("parallel",),   # batch elements are independent
            vmem_limit_bytes=vmem_limit,
        ),
        cost_estimate=cost,
    )(x3, rmask, bmask, wqkv_bf, bqkv2, wproj_bf, bproj2)
    return out.reshape(x.shape)


def _reference(x, gamma, beta, w_qkv, b_qkv, w_proj, b_proj, *,
               num_heads, num_groups=32, eps=1e-5):
    """Pure-JAX transcription of AttentionBlock._forward (legacy attention)."""
    B, C = x.shape[0], x.shape[1]
    T = int(np.prod(x.shape[2:]))
    xf = x.reshape(B, C, T).astype(jnp.float32)
    # GroupNorm32
    xg = xf.reshape(B, num_groups, (C // num_groups) * T)
    mean = jnp.mean(xg, axis=-1, keepdims=True)
    var = jnp.mean((xg - mean) ** 2, axis=-1, keepdims=True)
    xn = ((xg - mean) / jnp.sqrt(var + eps)).reshape(B, C, T)
    xn = xn * gamma[None, :, None] + beta[None, :, None]
    # qkv conv (1x1)
    qkv = jnp.einsum('oc,bct->bot', w_qkv, xn, precision=_HIGHEST) + b_qkv[None, :, None]
    H = num_heads
    ch = C // H
    qkv = qkv.reshape(B, H, 3, ch, T)
    scale = 1.0 / math.sqrt(math.sqrt(ch))
    q = qkv[:, :, 0] * scale
    k = qkv[:, :, 1] * scale
    v = qkv[:, :, 2]
    w = jnp.einsum('bhct,bhcs->bhts', q, k, precision=_HIGHEST)
    w = jax.nn.softmax(w, axis=-1)
    a = jnp.einsum('bhts,bhcs->bhct', w, v, precision=_HIGHEST).reshape(B, C, T)
    h = jnp.einsum('oc,bct->bot', w_proj, a, precision=_HIGHEST) + b_proj[None, :, None]
    return (xf + h).reshape(x.shape).astype(x.dtype)


if __name__ == "__main__":
    key = jax.random.PRNGKey(0)
    B, C, Hs, Ws = 2, 64, 16, 8          # spatial 16x8 -> T=128 (lane-dense)
    num_heads = 2                        # head channels ch = 32
    num_groups = 32                      # normalization() default (GroupNorm32)

    ks = jax.random.split(key, 7)
    x = jax.random.normal(ks[0], (B, C, Hs, Ws), dtype=jnp.float32)
    # The module initialises gamma=1, beta=0 and zero_module(proj_out)=0; use
    # small random parameters instead so the test exercises every term.
    gamma = 1.0 + 0.1 * jax.random.normal(ks[1], (C,), dtype=jnp.float32)
    beta = 0.1 * jax.random.normal(ks[2], (C,), dtype=jnp.float32)
    w_qkv = 0.1 * jax.random.normal(ks[3], (3 * C, C), dtype=jnp.float32)
    b_qkv = 0.1 * jax.random.normal(ks[4], (3 * C,), dtype=jnp.float32)
    w_proj = 0.1 * jax.random.normal(ks[5], (C, C), dtype=jnp.float32)
    b_proj = 0.1 * jax.random.normal(ks[6], (C,), dtype=jnp.float32)

    out = attention_block(x, gamma, beta, w_qkv, b_qkv, w_proj, b_proj,
                          num_heads=num_heads, num_groups=num_groups)
    out = jax.block_until_ready(out)

    ref = _reference(x, gamma, beta, w_qkv, b_qkv, w_proj, b_proj,
                     num_heads=num_heads, num_groups=num_groups)
    assert out.shape == x.shape
    # bf16 MXU operands (vs f32 HIGHEST reference) -> standard bf16 tolerance.
    err = float(jnp.max(jnp.abs(out - ref)))
    assert jnp.allclose(out, ref, atol=2e-2, rtol=2e-2), f"max abs err {err}"
    print("KERNEL_OK")
</pallas_src>

<mosaic_0001>
module attributes {stable_mosaic.version = 11 : i64} {
  func.func @_attention_block_kernel(%arg0: i32, %arg1: memref<1x64x128xf32, #tpu.memory_space<vmem>>, %arg2: memref<32x64xf32, #tpu.memory_space<vmem>>, %arg3: memref<64x32xf32, #tpu.memory_space<vmem>>, %arg4: memref<192x64xbf16, #tpu.memory_space<vmem>>, %arg5: memref<192x1xf32, #tpu.memory_space<vmem>>, %arg6: memref<64x64xbf16, #tpu.memory_space<vmem>>, %arg7: memref<64x1xf32, #tpu.memory_space<vmem>>, %arg8: memref<1x64x128xf32, #tpu.memory_space<vmem>>, %arg9: memref<192x128xf32, #tpu.memory_space<vmem>>, %arg10: memref<64x128xf32, #tpu.memory_space<vmem>>) attributes {dimension_semantics = [#tpu.dimension_semantics<parallel>], iteration_bounds = array<i64: 2>, scalar_prefetch = 0 : i64, scratch_operands = 2 : i64, tpu.core_type = #tpu.core_type<tc>, window_params = [{transform_indices = @transform_0, window_bounds = array<i64: 1, 64, 128>}, {pipeline_mode = #tpu.pipeline_mode<synchronous>, transform_indices = @transform_1, window_bounds = array<i64: 32, 64>}, {pipeline_mode = #tpu.pipeline_mode<synchronous>, transform_indices = @transform_2, window_bounds = array<i64: 64, 32>}, {pipeline_mode = #tpu.pipeline_mode<synchronous>, transform_indices = @transform_3, window_bounds = array<i64: 192, 64>}, {pipeline_mode = #tpu.pipeline_mode<synchronous>, transform_indices = @transform_4, window_bounds = array<i64: 192, 1>}, {pipeline_mode = #tpu.pipeline_mode<synchronous>, transform_indices = @transform_5, window_bounds = array<i64: 64, 64>}, {pipeline_mode = #tpu.pipeline_mode<synchronous>, transform_indices = @transform_6, window_bounds = array<i64: 64, 1>}, {transform_indices = @transform_7, window_bounds = array<i64: 1, 64, 128>}]} {
    %c0 = arith.constant 0 : index
    %c0_0 = arith.constant 0 : index
    %c0_1 = arith.constant 0 : index
    %0 = vector.load %arg1[%c0, %c0_0, %c0_1] : memref<1x64x128xf32, #tpu.memory_space<vmem>>, vector<1x64x128xf32>
    %1 = vector.shape_cast %0 : vector<1x64x128xf32> to vector<64x128xf32>
    %cst = arith.constant dense<0.000000e+00> : vector<64xf32>
    %2 = vector.multi_reduction <add>, %1, %cst [1] : vector<64x128xf32> to vector<64xf32>
    %3 = vector.shape_cast %2 : vector<64xf32> to vector<64x1xf32>
    %4 = arith.mulf %1, %1 : vector<64x128xf32>
    %cst_2 = arith.constant dense<0.000000e+00> : vector<64xf32>
    %5 = vector.multi_reduction <add>, %4, %cst_2 [1] : vector<64x128xf32> to vector<64xf32>
    %6 = vector.shape_cast %5 : vector<64xf32> to vector<64x1xf32>
    %c0_3 = arith.constant 0 : index
    %c0_4 = arith.constant 0 : index
    %7 = vector.load %arg2[%c0_3, %c0_4] : memref<32x64xf32, #tpu.memory_space<vmem>>, vector<32x64xf32>
    %c0_5 = arith.constant 0 : index
    %c0_6 = arith.constant 0 : index
    %8 = vector.load %arg3[%c0_5, %c0_6] : memref<64x32xf32, #tpu.memory_space<vmem>>, vector<64x32xf32>
    %cst_7 = arith.constant dense<0.000000e+00> : vector<32x1xf32>
    %9 = tpu.matmul %7, %3, %cst_7 {dimension_numbers = #tpu.dot_dimension_numbers<[1], [0], [0], [1], [0, 0, 1, 1], [], []>, precision = #tpu.contract_precision<fp32>} : vector<32x64xf32>, vector<64x1xf32>, vector<32x1xf32> -> vector<32x1xf32>
    %cst_8 = arith.constant 3.906250e-03 : f32
    %10 = vector.broadcast %cst_8 : f32 to vector<32x1xf32>
    %11 = arith.mulf %9, %10 : vector<32x1xf32>
    %cst_9 = arith.constant dense<0.000000e+00> : vector<32x1xf32>
    %12 = tpu.matmul %7, %6, %cst_9 {dimension_numbers = #tpu.dot_dimension_numbers<[1], [0], [0], [1], [0, 0, 1, 1], [], []>, precision = #tpu.contract_precision<fp32>} : vector<32x64xf32>, vector<64x1xf32>, vector<32x1xf32> -> vector<32x1xf32>
    %cst_10 = arith.constant 3.906250e-03 : f32
    %13 = vector.broadcast %cst_10 : f32 to vector<32x1xf32>
    %14 = arith.mulf %12, %13 : vector<32x1xf32>
    %15 = arith.mulf %11, %11 : vector<32x1xf32>
    %16 = arith.subf %14, %15 : vector<32x1xf32>
    %cst_11 = arith.constant 0.000000e+00 : f32
    %17 = vector.broadcast %cst_11 : f32 to vector<32x1xf32>
    %18 = arith.maximumf %16, %17 : vector<32x1xf32>
    %cst_12 = arith.constant 9.99999974E-6 : f32
    %19 = vector.broadcast %cst_12 : f32 to vector<32x1xf32>
    %20 = arith.addf %18, %19 : vector<32x1xf32>
    %21 = math.rsqrt %20 : vector<32x1xf32>
    %cst_13 = arith.constant dense<0.000000e+00> : vector<64x1xf32>
    %22 = tpu.matmul %8, %11, %cst_13 {dimension_numbers = #tpu.dot_dimension_numbers<[1], [0], [0], [1], [0, 0, 1, 1], [], []>, precision = #tpu.contract_precision<fp32>} : vector<64x32xf32>, vector<32x1xf32>, vector<64x1xf32> -> vector<64x1xf32>
    %cst_14 = arith.constant dense<0.000000e+00> : vector<64x1xf32>
    %23 = tpu.matmul %8, %21, %cst_14 {dimension_numbers = #tpu.dot_dimension_numbers<[1], [0], [0], [1], [0, 0, 1, 1], [], []>, precision = #tpu.contract_precision<fp32>} : vector<64x32xf32>, vector<32x1xf32>, vector<64x1xf32> -> vector<64x1xf32>
    %24 = vector.broadcast %22 : vector<64x1xf32> to vector<64x128xf32>
    %25 = arith.subf %1, %24 : vector<64x128xf32>
    %26 = vector.broadcast %23 : vector<64x1xf32> to vector<64x128xf32>
    %27 = arith.mulf %25, %26 : vector<64x128xf32>
    %28 = arith.truncf %27 : vector<64x128xf32> to vector<64x128xbf16>
    %c0_15 = arith.constant 0 : index
    %c0_16 = arith.constant 0 : index
    %29 = vector.load %arg4[%c0_15, %c0_16] : memref<192x64xbf16, #tpu.memory_space<vmem>>, vector<192x64xbf16>
    %cst_17 = arith.constant dense<0.000000e+00> : vector<192x128xf32>
    %30 = tpu.matmul %29, %28, %cst_17 {dimension_numbers = #tpu.dot_dimension_numbers<[1], [0], [0], [1], [0, 0, 1, 1], [], []>} : vector<192x64xbf16>, vector<64x128xbf16>, vector<192x128xf32> -> vector<192x128xf32>
    %c0_18 = arith.constant 0 : index
    %c0_19 = arith.constant 0 : index
    %31 = vector.load %arg5[%c0_18, %c0_19] : memref<192x1xf32, #tpu.memory_space<vmem>>, vector<192x1xf32>
    %32 = vector.broadcast %31 : vector<192x1xf32> to vector<192x128xf32>
    %33 = arith.addf %30, %32 : vector<192x128xf32>
    %c0_20 = arith.constant 0 : index
    %c0_21 = arith.constant 0 : index
    %34 = vector.load %arg9[%c0_20, %c0_21] : memref<192x128xf32, #tpu.memory_space<vmem>>, vector<192x128xf32>
    tpu.vector_store %arg9[%c0_20, %c0_21], %33 {strides = array<i32>} : memref<192x128xf32, #tpu.memory_space<vmem>>, vector<192x128xf32>,
    %c0_i32 = arith.constant 0 : i32
    %c2_i32 = arith.constant 2 : i32
    %35 = arith.addi %c0_i32, %c2_i32 : i32
    %c1_i32 = arith.constant 1 : i32
    scf.for %arg11 = %c0_i32 to %35 step %c1_i32  : i32 {
      %c96_i32 = arith.constant 96 : i32
      %47 = arith.muli %arg11, %c96_i32 : i32
      %48 = tpu.assume_multiple %47, 32 : i32
      %49 = arith.index_cast %48 : i32 to index
      %c0_33 = arith.constant 0 : index
      %50 = vector.load %arg9[%49, %c0_33] : memref<192x128xf32, #tpu.memory_space<vmem>>, vector<32x128xf32>
      %51 = arith.truncf %50 : vector<32x128xf32> to vector<32x128xbf16>
      %c32_i32 = arith.constant 32 : i32
      %52 = arith.addi %48, %c32_i32 : i32
      %53 = arith.index_cast %52 : i32 to index
      %c0_34 = arith.constant 0 : index
      %54 = vector.load %arg9[%53, %c0_34] : memref<192x128xf32, #tpu.memory_space<vmem>>, vector<32x128xf32>
      %55 = arith.truncf %54 : vector<32x128xf32> to vector<32x128xbf16>
      %c64_i32 = arith.constant 64 : i32
      %56 = arith.addi %48, %c64_i32 : i32
      %57 = arith.index_cast %56 : i32 to index
      %c0_35 = arith.constant 0 : index
      %58 = vector.load %arg9[%57, %c0_35] : memref<192x128xf32, #tpu.memory_space<vmem>>, vector<32x128xf32>
      %59 = arith.truncf %58 : vector<32x128xf32> to vector<32x128xbf16>
      %cst_36 = arith.constant dense<0.000000e+00> : vector<128x128xf32>
      %60 = tpu.matmul %51, %55, %cst_36 {dimension_numbers = #tpu.dot_dimension_numbers<[0], [0], [1], [1], [0, 1, 1, 1], [], []>} : vector<32x128xbf16>, vector<32x128xbf16>, vector<128x128xf32> -> vector<128x128xf32>
      %cst_37 = arith.constant dense<0xFF800000> : vector<128xf32>
      %61 = vector.multi_reduction <maximumf>, %60, %cst_37 [1] : vector<128x128xf32> to vector<128xf32>
      %62 = vector.shape_cast %61 : vector<128xf32> to vector<128x1xf32>
      %63 = vector.broadcast %62 : vector<128x1xf32> to vector<128x128xf32>
      %64 = arith.subf %60, %63 : vector<128x128xf32>
      %65 = math.exp %64 : vector<128x128xf32>
      %cst_38 = arith.constant dense<0.000000e+00> : vector<128xf32>
      %66 = vector.multi_reduction <add>, %65, %cst_38 [1] : vector<128x128xf32> to vector<128xf32>
      %67 = vector.shape_cast %66 : vector<128xf32> to vector<128x1xf32>
      %68 = tpu.reciprocal %67 {approx = true} : vector<128x1xf32> -> vector<128x1xf32>
      %69 = vector.broadcast %68 : vector<128x1xf32> to vector<128x128xf32>
      %70 = arith.mulf %65, %69 : vector<128x128xf32>
      %71 = arith.truncf %70 : vector<128x128xf32> to vector<128x128xbf16>
      %cst_39 = arith.constant dense<0.000000e+00> : vector<32x128xf32>
      %72 = tpu.matmul %59, %71, %cst_39 {dimension_numbers = #tpu.dot_dimension_numbers<[1], [1], [0], [0], [0, 0, 1, 0], [], []>} : vector<32x128xbf16>, vector<128x128xbf16>, vector<32x128xf32> -> vector<32x128xf32>
      %c32_i32_40 = arith.constant 32 : i32
      %73 = arith.muli %arg11, %c32_i32_40 : i32
      %74 = tpu.assume_multiple %73, 32 : i32
      %75 = arith.index_cast %74 : i32 to index
      %c0_41 = arith.constant 0 : index
      %76 = vector.load %arg10[%75, %c0_41] : memref<64x128xf32, #tpu.memory_space<vmem>>, vector<32x128xf32>
      tpu.vector_store %arg10[%75, %c0_41], %72 {strides = array<i32>} : memref<64x128xf32, #tpu.memory_space<vmem>>, vector<32x128xf32>,
    }
    %c2_i32_22 = arith.constant 2 : i32
    %c0_23 = arith.constant 0 : index
    %c0_24 = arith.constant 0 : index
    %36 = vector.load %arg6[%c0_23, %c0_24] : memref<64x64xbf16, #tpu.memory_space<vmem>>, vector<64x64xbf16>
    %c0_25 = arith.constant 0 : index
    %c0_26 = arith.constant 0 : index
    %37 = vector.load %arg10[%c0_25, %c0_26] : memref<64x128xf32, #tpu.memory_space<vmem>>, vector<64x128xf32>
    %38 = arith.truncf %37 : vector<64x128xf32> to vector<64x128xbf16>
    %cst_27 = arith.constant dense<0.000000e+00> : vector<64x128xf32>
    %39 = tpu.matmul %36, %38, %cst_27 {dimension_numbers = #tpu.dot_dimension_numbers<[1], [0], [0], [1], [0, 0, 1, 1], [], []>} : vector<64x64xbf16>, vector<64x128xbf16>, vector<64x128xf32> -> vector<64x128xf32>
    %40 = arith.addf %1, %39 : vector<64x128xf32>
    %c0_28 = arith.constant 0 : index
    %c0_29 = arith.constant 0 : index
    %41 = vector.load %arg7[%c0_28, %c0_29] : memref<64x1xf32, #tpu.memory_space<vmem>>, vector<64x1xf32>
    %42 = vector.broadcast %41 : vector<64x1xf32> to vector<64x128xf32>
    %43 = arith.addf %40, %42 : vector<64x128xf32>
    %c0_30 = arith.constant 0 : index
    %c0_31 = arith.constant 0 : index
    %c0_32 = arith.constant 0 : index
    %44 = vector.load %arg8[%c0_30, %c0_31, %c0_32] : memref<1x64x128xf32, #tpu.memory_space<vmem>>, vector<1x64x128xf32>
    %45 = vector.shape_cast %44 : vector<1x64x128xf32> to vector<64x128xf32>
    %46 = vector.shape_cast %43 : vector<64x128xf32> to vector<1x64x128xf32>
    tpu.vector_store %arg8[%c0_30, %c0_31, %c0_32], %46 {strides = array<i32>} : memref<1x64x128xf32, #tpu.memory_space<vmem>>, vector<1x64x128xf32>,
    return
  }
  func.func @transform_0(%arg0: i32) -> (i32, i32, i32) {
    %c0_i32 = arith.constant 0 : i32
    %c0_i32_0 = arith.constant 0 : i32
    %c0_i32_1 = arith.constant 0 : i32
    return %arg0, %c0_i32, %c0_i32_0 : i32, i32, i32
  }
  func.func @transform_1(%arg0: i32) -> (i32, i32) {
    %c0_i32 = arith.constant 0 : i32
    %c0_i32_0 = arith.constant 0 : i32
    %c0_i32_1 = arith.constant 0 : i32
    return %c0_i32, %c0_i32_0 : i32, i32
  }
  func.func @transform_2(%arg0: i32) -> (i32, i32) {
    %c0_i32 = arith.constant 0 : i32
    %c0_i32_0 = arith.constant 0 : i32
    %c0_i32_1 = arith.constant 0 : i32
    return %c0_i32, %c0_i32_0 : i32, i32
  }
  func.func @transform_3(%arg0: i32) -> (i32, i32) {
    %c0_i32 = arith.constant 0 : i32
    %c0_i32_0 = arith.constant 0 : i32
    %c0_i32_1 = arith.constant 0 : i32
    return %c0_i32, %c0_i32_0 : i32, i32
  }
  func.func @transform_4(%arg0: i32) -> (i32, i32) {
    %c0_i32 = arith.constant 0 : i32
    %c0_i32_0 = arith.constant 0 : i32
    %c0_i32_1 = arith.constant 0 : i32
    return %c0_i32, %c0_i32_0 : i32, i32
  }
  func.func @transform_5(%arg0: i32) -> (i32, i32) {
    %c0_i32 = arith.constant 0 : i32
    %c0_i32_0 = arith.constant 0 : i32
    %c0_i32_1 = arith.constant 0 : i32
    return %c0_i32, %c0_i32_0 : i32, i32
  }
  func.func @transform_6(%arg0: i32) -> (i32, i32) {
    %c0_i32 = arith.constant 0 : i32
    %c0_i32_0 = arith.constant 0 : i32
    %c0_i32_1 = arith.constant 0 : i32
    return %c0_i32, %c0_i32_0 : i32, i32
  }
  func.func @transform_7(%arg0: i32) -> (i32, i32, i32) {
    %c0_i32 = arith.constant 0 : i32
    %c0_i32_0 = arith.constant 0 : i32
    %c0_i32_1 = arith.constant 0 : i32
    return %arg0, %c0_i32, %c0_i32_0 : i32, i32, i32
  }
}

</mosaic_0001>

<bundles_post_ra>
// kernel: tpu_custom_call.1
= control target key start
LH: loop header
LB: loop body
LE: loop exit
PB: predicated region body
PF: predicated region fallthrough
CT: control target
= control target key end

     0   :  { %12 = vsyncpa [#allocation5], 0  ;;  %s4452_s0 = inlined_call_operand.vmem [shape: f32[2,64,128], index: 0, kind: input, shape index: {}]   ;;  %s4453_s1 = inlined_call_operand.vmem [shape: f32[32,64], index: 1, kind: input, shape index: {}]   ;;  %s4454_s2 = inlined_call_operand.vmem [shape: f32[64,32], index: 2, kind: input, shape index: {}]   ;;  %s4455_s3 = inlined_call_operand.vmem [shape: bf16[192,64], index: 3, kind: input, shape index: {}]   ;;  %s4456_s4 = inlined_call_operand.vmem [shape: f32[192,1], index: 4, kind: input, shape index: {}]   ;;  %s4457_s5 = inlined_call_operand.vmem [shape: bf16[64,64], index: 5, kind: input, shape index: {}]   ;;  %s4458_s6 = inlined_call_operand.vmem [shape: f32[64,1], index: 6, kind: input, shape index: {}]   ;;  %s4459_s7 = inlined_call_operand.hbm [shape: f32[2,64,128], index: 7, kind: output, shape index: {}]  }
   0x1   :  { %14 = vsyncpa [#allocation5 + $0x1], 0  ;;  %s3320_s24 = smov 0   ;;  %s3322_s25 = smov 0  }
   0x2   :  { %s3324_s26 = smov 0   ;;  %s3326_s27 = smov 0  }
   0x3 LB: > { %s3341_s28 = sadd.s32 4294967295, %s3271_s27   ;;  %s2903_s29 = sadd.s32 4294967294, %s3271_s27   ;;  %s3271_s27 = sphi %s3326_s27, %s4465_s27   ;;  %s3267_s26 = sphi %s3324_s26, %s4464_s26   ;;  %s3263_s25 = sphi %s3322_s25, %s4463_s25   ;;  %s3259_s24 = sphi %s3320_s24, %s4462_s24  }
   0x4   : > { %s3345_s30 = sadd.s32 1, %s3271_s27   ;;  %s179_s8 = sadd.s32 1, %s3267_s26 }
   0x5   : > { %s176_s9 = ssub.s32 %s3271_s27, %s3345_s30  ;;  %p189_p0 = scmp.ne.s32.totalorder %s3267_s26, %s3263_s25 }
   0x6   : > { %p177_p1 = scmp.eq.s32.totalorder %s176_s9, 0  ;;  %p190_p2 = scmp.eq.s32.totalorder %s3341_s28, 1 }
   0x7   : > { %p195_p3 = scmp.ne.s32.totalorder %s3263_s25, %s3259_s24  ;;  %p196_p4 = scmp.eq.s32.totalorder %s2903_s29, 1 }
   0x8   : > { %s3356_s10 = scalar_select %p177_p1, %s3267_s26, %s179_s8  }
   0x9   : > { %p3358_p5 = por %p190_p2, %p189_p0  ;;  %p3362_p6 = por %p196_p4, %p195_p3 }
   0xa   : > { %p2906_p7 = scmp.ge.s32.totalorder %s3271_s27, 1  ;;  %p240_p8 = scmp.lt.s32.totalorder %s3271_s27, 3 }
   0xc   : > { %p241_p9 = pnand %p2906_p7, %p240_p8 }
   0xd   : > { %p272_p10 = scmp.lt.s32.totalorder (!%p241_p9), %s3341_s28, 1  ;;  %s269_s13 = sand.u32 (!%p241_p9), 1, %s3263_s25  }
   0xe   : > { %244 = sbr.rel (%p241_p9) target bundleno = 2283 (0x8eb), region = 48  ;;  %s3372_s14 = sshll.u32 (!%p241_p9), %s269_s13, 6 }
   0xf   : > { %s4225_s9 = scalar_lea.vmem (!%p241_p9), [#allocation4], %s3372_s14 }
  0x13   : > { %s273_s15 = scalar_select %p272_p10, %s3341_s28, 1  ;;  %v326_v16 = vld [vmem:[%s4453_s1] sm:$0xff]  ;;  %vm338_vm0 = vcmask 523264   ;;  %v327_v26 = vld [vmem:[%s4453_s1 + $0x8] sm:$0xff]  ;;  %v328_v51 = vld [vmem:[%s4453_s1 + $0x10] sm:$0xff]  ;;  %vm1075_vm1 = vcmask 261120  }
  0x14   : > { %v340_v21 = vsel %vm338_vm0, %v326_v16, 0  ;;  %v343_v37 = vsel %vm338_vm0, %v327_v26, 0  ;;  %v346_v61 = vsel %vm338_vm0, %v328_v51, 0 }
  0x15   : > { %s3012_s16 = sshll.u32 %s273_s15, 6  ;;  %v3440_v24 = vand.u32 4294901760, %v340_v21  ;;  %v3482_v45 = vand.u32 4294901760, %v343_v37  ;;  %v3539_v16 = vand.u32 4294901760, %v346_v61  ;;  %s4227_s15 = smov 0  }
  0x16   : > { %s3378_s19 = scalar_lea.vmem %s4452_s0, %s3012_s16 }
  0x17   : > { %v3381_v0 = vld [vmem:[%s3378_s19 + $0x38] sm:$0xff]  ;;  %v3384_v1 = vld [vmem:[%s3378_s19 + $0x28] sm:$0xff]  ;;  %v3393_v3 = vld [vmem:[%s3378_s19 + $0x30] sm:$0xff]  ;;  %v3456_v32 = vsub.f32 %v340_v21, %v3440_v24  ;;  %v3504_v56 = vsub.f32 %v343_v37, %v3482_v45 }
  0x18   : > { %v3387_v2 = vld [vmem:[%s3378_s19 + $0x18] sm:$0xff]  ;;  %300 = vadd.xlane.f32.xlu0 %v3381_v0  ;;  %296 = vadd.xlane.f32.xlu1 %v3384_v1  ;;  %v3396_v4 = vld [vmem:[%s3378_s19 + $0x20] sm:$0xff]  ;;  %v3399_v5 = vld [vmem:[%s3378_s19 + $0x10] sm:$0xff]  ;;  %v309_v8 = vmul.f32 %v3381_v0, %v3381_v0  ;;  %v308_v9 = vmul.f32 %v3393_v3, %v3393_v3  ;;  %v307_v10 = vmul.f32 %v3384_v1, %v3384_v1 }
  0x19   : > { %292 = vadd.xlane.f32.xlu2 %v3387_v2  ;;  %v3405_v6 = vld [vmem:[%s3378_s19 + $0x8] sm:$0xff]  ;;  %v3408_v7 = vld [vmem:[%s3378_s19] sm:$0xff]  ;;  %v306_v11 = vmul.f32 %v3396_v4, %v3396_v4  ;;  %v305_v12 = vmul.f32 %v3387_v2, %v3387_v2  ;;  %v304_v13 = vmul.f32 %v3399_v5, %v3399_v5  ;;  %v3480_v44 = vand.u32 4294901760, %v3456_v32 }
  0x1a   : > { %v303_v14 = vmul.f32 %v3405_v6, %v3405_v6  ;;  %v302_v15 = vmul.f32 %v3408_v7, %v3408_v7 }
  0x1b   : > { %v378_v54 = vsub.f32 %v3456_v32, %v3480_v44 }
  0x20   : > { %298 = vadd.xlane.f32.xlu0 %v3393_v3  ;;  %294 = vadd.xlane.f32.xlu1 %v3396_v4 }
  0x21   : > { %290 = vadd.xlane.f32.xlu2 %v3399_v5 }
  0x28   : > { %288 = vadd.xlane.f32.xlu0 %v3405_v6  ;;  %286 = vadd.xlane.f32.xlu1 %v3408_v7 }
  0x29   : > { %324 = vadd.xlane.f32.xlu2 %v309_v8 }
  0x30   : > { %322 = vadd.xlane.f32.xlu0 %v308_v9  ;;  %320 = vadd.xlane.f32.xlu1 %v307_v10  ;;  %v3527_v10 = vand.u32 4294901760, %v378_v54 }
  0x31   : > { %318 = vadd.xlane.f32.xlu2 %v306_v11  ;;  %v3530_v11 = vand.u32 4294901760, %v3504_v56 }
  0x33   : > { %v386_v26 = vsub.f32 %v3504_v56, %v3530_v11 }
  0x35   : > { %v3563_v37 = vand.u32 4294901760, %v386_v26 }
  0x38   : > { %316 = vadd.xlane.f32.xlu0 %v305_v12  ;;  %314 = vadd.xlane.f32.xlu1 %v304_v13 }
  0x39   : > { %312 = vadd.xlane.f32.xlu2 %v303_v14 }
  0x40   : > { %310 = vadd.xlane.f32.xlu0 %v302_v15 }
  0x8b   : > { %v301_v17 = vpop.xlane.xlu0 %300  ;;  %v297_v18 = vpop.xlane.xlu1 %296 }
  0x8c   : > { %v3431_v19 = vand.u32 4294901760, %v301_v17  ;;  %v293_v20 = vpop.xlane.xlu2 %292  ;;  %v3437_v23 = vand.u32 4294901760, %v297_v18 }
  0x8d   : > { %v3450_v28 = vand.u32 4294901760, %v293_v20 }
  0x8e   : > { %v3435_v22 = vsub.f32 %v301_v17, %v3431_v19  ;;  %360 = vmatpush.msra.mxu3 %v3431_v19  ;;  %v3448_v27 = vsub.f32 %v297_v18, %v3437_v23 }
  0x8f   : > { %v3466_v39 = vsub.f32 %v293_v20, %v3450_v28 }
  0x90   : > { %491 = vmatpush.msra.mxu2 %v3435_v22  ;;  %v418_v25 = vand.u32 4294901760, %v3435_v22  ;;  %v430_v42 = vand.u32 4294901760, %v3448_v27 }
  0x91   : > { %v442_v50 = vand.u32 4294901760, %v3466_v39 }
  0x92   : > { %v419_v29 = vsub.f32 %v3435_v22, %v418_v25  ;;  %v431_v49 = vsub.f32 %v3448_v27, %v430_v42 }
  0x93   : > { %v299_v30 = vpop.xlane.xlu0 %298  ;;  %v295_v31 = vpop.xlane.xlu1 %294  ;;  %v443_v9 = vsub.f32 %v3466_v39, %v442_v50 }
  0x94   : > { %v3458_v33 = vand.u32 4294901760, %v299_v30  ;;  %v3460_v34 = vand.u32 4294901760, %v295_v31  ;;  %v420_v35 = vand.u32 4294901760, %v419_v29  ;;  %v291_v36 = vpop.xlane.xlu2 %290  ;;  %v432_v8 = vand.u32 4294901760, %v431_v49  ;;  %v329_v29 = vld [vmem:[%s4453_s1 + $0x18] sm:$0xff] }
  0x95   : > { %v3463_v38 = vand.u32 4294901760, %v291_v36  ;;  %v444_v17 = vand.u32 4294901760, %v443_v9 }
  0x96   : > { %v3469_v40 = vsub.f32 %v299_v30, %v3458_v33  ;;  %v3472_v41 = vsub.f32 %v295_v31, %v3460_v34  ;;  %362 = vmatpush.msra.mxu3 %v3458_v33  ;;  %421 = vmatpush.msra.mxu0 %v420_v35  ;;  %v3557_v30 = vsub.f32 %v346_v61, %v3539_v16 }
  0x97   : > { %3030 = vmatpush.msra.mxu1 %v420_v35  ;;  %v3477_v43 = vsub.f32 %v291_v36, %v3463_v38  ;;  %v349_v35 = vsel %vm338_vm0, %v329_v29, 0 }
  0x98   : > { %364 = vmatpush.msra.mxu3 %v3437_v23  ;;  %494 = vmatpush.msra.mxu2 %v3469_v40  ;;  %v424_v46 = vand.u32 4294901760, %v3469_v40  ;;  %v436_v47 = vand.u32 4294901760, %v3472_v41  ;;  %v3569_v49 = vand.u32 4294901760, %v349_v35 }
  0x99   : > { %v448_v55 = vand.u32 4294901760, %v3477_v43 }
  0x9a   : > { %366 = vmatpush.msra.mxu3 %v3460_v34  ;;  %497 = vmatpush.msra.mxu2 %v3448_v27  ;;  %v425_v48 = vsub.f32 %v3469_v40, %v424_v46  ;;  %v437_v60 = vsub.f32 %v3472_v41, %v436_v47 }
  0x9b   : > { %v289_v52 = vpop.xlane.xlu0 %288  ;;  %v287_v53 = vpop.xlane.xlu1 %286  ;;  %v449_v13 = vsub.f32 %v3477_v43, %v448_v55 }
  0x9c   : > { %v3506_v57 = vand.u32 4294901760, %v289_v52  ;;  %v3508_v58 = vand.u32 4294901760, %v287_v53  ;;  %368 = vmatpush.msra.mxu3 %v3450_v28  ;;  %500 = vmatpush.msra.mxu2 %v3472_v41  ;;  %v426_v59 = vand.u32 4294901760, %v425_v48  ;;  %v438_v12 = vand.u32 4294901760, %v437_v60 }
  0x9d   : > { %v450_v20 = vand.u32 4294901760, %v449_v13  ;;  %v3567_v48 = vand.u32 4294901760, %v3557_v30 }
  0x9e   : > { %v3517_v62 = vsub.f32 %v289_v52, %v3506_v57  ;;  %v3520_v63 = vsub.f32 %v287_v53, %v3508_v58  ;;  %370 = vmatpush.msra.mxu3 %v3463_v38  ;;  %427 = vmatpush.msra.mxu0 %v426_v59  ;;  %v3581_v52 = vsub.f32 %v349_v35, %v3569_v49 }
  0x9f   : > { %3031 = vmatpush.msra.mxu1 %v426_v59  ;;  %503 = vmatpush.msra.mxu2 %v3466_v39  ;;  %v394_v51 = vsub.f32 %v3557_v30, %v3567_v48 }
  0xa0   : > { %372 = vmatpush.msra.mxu3 %v3506_v57  ;;  %433 = vmatpush.msra.mxu0 %v432_v8  ;;  %v454_v14 = vand.u32 4294901760, %v3517_v62  ;;  %v460_v15 = vand.u32 4294901760, %v3520_v63 }
  0xa1   : > { %3032 = vmatpush.msra.mxu1 %v432_v8  ;;  %506 = vmatpush.msra.mxu2 %v3477_v43 }
  0xa2   : > { %374 = vmatpush.msra.mxu3 %v3508_v58  ;;  %439 = vmatpush.msra.mxu0 %v438_v12  ;;  %v455_v18 = vsub.f32 %v3517_v62, %v454_v14  ;;  %v461_v21 = vsub.f32 %v3520_v63, %v460_v15 }
  0xa3   : > { %3033 = vmatpush.msra.mxu1 %v438_v12  ;;  %509 = vmatpush.msra.mxu2 %v3517_v62 }
  0xa4   : > { %380 = vmatmul.f32.vlgmr.msra.gmra.mxu3 %v3527_v10  ;;  %445 = vmatpush.msra.mxu0 %v444_v17  ;;  %v456_v31 = vand.u32 4294901760, %v455_v18  ;;  %v462_v36 = vand.u32 4294901760, %v461_v21 }
  0xa5   : > { %3038 = vmatpush.msrb.mxu3 %v3435_v22  ;;  %3034 = vmatpush.msra.mxu1 %v444_v17  ;;  %v3591_v22 = vand.u32 4294901760, %v394_v51 }
  0xa6   : > { %512 = vmatpush.msra.mxu2 %v3520_v63  ;;  %451 = vmatpush.msra.mxu0 %v450_v20 }
  0xa7   : > { %3039 = vmatpush.msrb.mxu3 %v3469_v40  ;;  %3035 = vmatpush.msra.mxu1 %v450_v20  ;;  %v325_v40 = vpop.xlane.xlu2 %324 }
  0xa8   : > { %515 = vmatmul.f32.vlgmr.msra.gmra.mxu2 %v3456_v32  ;;  %457 = vmatpush.msra.mxu0 %v456_v31 }
  0xa9   : > { %3040 = vmatpush.msrb.mxu3 %v3448_v27  ;;  %3036 = vmatpush.msra.mxu1 %v456_v31 }
  0xaa   : > { %463 = vmatpush.msra.mxu0 %v462_v36 }
  0xab   : > { %3041 = vmatpush.msrb.mxu3 %v3472_v41  ;;  %3037 = vmatpush.msra.mxu1 %v462_v36  ;;  %v3611_v41 = vand.u32 4294901760, %v325_v40 }
  0xac   : > { %388 = vmatmul.f32.gmra.mxu3 %v3563_v37  ;;  %465 = vmatmul.f32.vlgmr.msra.gmra.mxu0 %v3440_v24 }
  0xad   : > { %3042 = vmatpush.msrb.mxu3 %v3466_v39  ;;  %594 = vmatpush.msrb.mxu0 %v418_v25  ;;  %v3595_v25 = vand.u32 4294901760, %v3581_v52 }
  0xae   : > { %649 = vmatpush.msrb.mxu1 %v3431_v19  ;;  %694 = vmatpush.msrb.mxu2 %v3611_v41 }
  0xaf   : > { %3043 = vmatpush.msrb.mxu3 %v3477_v43  ;;  %598 = vmatpush.msrb.mxu0 %v424_v46  ;;  %v402_v27 = vsub.f32 %v3581_v52, %v3595_v25  ;;  %v321_v46 = vpop.xlane.xlu1 %320 }
  0xb0   : > { %651 = vmatpush.msrb.mxu1 %v3458_v33  ;;  %520 = vmatmul.f32.gmra.mxu2 %v3504_v56 }
  0xb1   : > { %3044 = vmatpush.msrb.mxu3 %v3517_v62  ;;  %602 = vmatpush.msrb.mxu0 %v430_v42  ;;  %v323_v42 = vpop.xlane.xlu0 %322 }
  0xb2   : > { %653 = vmatpush.msrb.mxu1 %v3437_v23  ;;  %v3620_v39 = vand.u32 4294901760, %v323_v42 }
  0xb3   : > { %3045 = vmatpush.msrb.mxu3 %v3520_v63  ;;  %606 = vmatpush.msrb.mxu0 %v436_v47 }
  0xb4   : > { %655 = vmatpush.msrb.mxu1 %v3460_v34  ;;  %396 = vmatmul.f32.gmra.mxu3 %v3591_v22 }
  0xb5   : > { %543 = vmatpush.msra.mxu3 %v3431_v19  ;;  %469 = vmatmul.f32.gmra.mxu0 %v3482_v45  ;;  %v3618_v19 = vsub.f32 %v325_v40, %v3611_v41 }
  0xb6   : > { %610 = vmatpush.msrb.mxu0 %v442_v50  ;;  %657 = vmatpush.msrb.mxu1 %v3450_v28 }
  0xb7   : > { %545 = vmatpush.msra.mxu3 %v3458_v33  ;;  %473 = vmatmul.f32.vlgmr.msra.gmra.mxu1 %v3539_v16  ;;  %v3626_v33 = vand.u32 4294901760, %v402_v27  ;;  %v752_v43 = vand.u32 4294901760, %v3618_v19  ;;  %v315_v63 = vpop.xlane.xlu1 %314 }
  0xb8   : > { %614 = vmatpush.msrb.mxu0 %v448_v55  ;;  %659 = vmatpush.msrb.mxu1 %v3463_v38 }
  0xb9   : > { %547 = vmatpush.msra.mxu3 %v3437_v23  ;;  %696 = vmatpush.msrb.mxu2 %v3620_v39  ;;  %v3636_v23 = vsub.f32 %v323_v42, %v3620_v39  ;;  %v753_v47 = vsub.f32 %v3618_v19, %v752_v43  ;;  %v317_v53 = vpop.xlane.xlu0 %316 }
  0xba   : > { %618 = vmatpush.msrb.mxu0 %v454_v14  ;;  %661 = vmatpush.msrb.mxu1 %v3506_v57  ;;  %v3650_v54 = vand.u32 4294901760, %v317_v53  ;;  %v3688_v14 = vand.u32 4294901760, %v315_v63 }
  0xbb   : > { %549 = vmatpush.msra.mxu3 %v3460_v34  ;;  %v319_v34 = vpop.xlane.xlu2 %318  ;;  %v754_v60 = vand.u32 4294901760, %v753_v47 }
  0xbc   : > { %622 = vmatpush.msrb.mxu0 %v460_v15  ;;  %663 = vmatpush.msrb.mxu1 %v3508_v58  ;;  %v3648_v50 = vand.u32 4294901760, %v319_v34  ;;  %v781_v26 = vsub.f32 %v315_v63, %v3688_v14  ;;  %v330_v63 = vld [vmem:[%s4454_s2] sm:$0xff] }
  0xbd   : > { %551 = vmatpush.msra.mxu3 %v3450_v28  ;;  %624 = vmatmul.f32.vlgmr.msrb.gmra.mxu0 %v3440_v24  ;;  %v3646_v28 = vand.u32 4294901760, %v321_v46 }
  0xbe   : > { %404 = vmatmul.f32.gmra.mxu3 %v3626_v33  ;;  %825 = vmatpush.msra.mxu0 %v3618_v19  ;;  %v3660_v59 = vsub.f32 %v319_v34, %v3648_v50  ;;  %v782_v36 = vand.u32 4294901760, %v781_v26 }
  0xbf   : > { %553 = vmatpush.msra.mxu3 %v3463_v38  ;;  %477 = vmatmul.f32.gmra.mxu1 %v3569_v49  ;;  %v758_v38 = vand.u32 4294901760, %v3636_v23  ;;  %v3657_v55 = vsub.f32 %v321_v46, %v3646_v28 }
  0xc0   : > { %877 = vmatpush.msra.mxu1 %v3611_v41  ;;  %828 = vmatpush.msra.mxu0 %v3636_v23  ;;  %v770_v62 = vand.u32 4294901760, %v3660_v59  ;;  %v783_v46 = vsub.f32 %v781_v26, %v782_v36 }
  0xc1   : > { %555 = vmatpush.msra.mxu3 %v3506_v57  ;;  %698 = vmatpush.msrb.mxu2 %v3646_v28  ;;  %v764_v61 = vand.u32 4294901760, %v3657_v55  ;;  %v3668_v57 = vsub.f32 %v317_v53, %v3650_v54  ;;  %v311_v18 = vpop.xlane.xlu0 %310 }
  0xc2   : > { %879 = vmatpush.msra.mxu1 %v3620_v39  ;;  %831 = vmatpush.msra.mxu0 %v3657_v55  ;;  %v771_v12 = vsub.f32 %v3660_v59, %v770_v62  ;;  %v707_v20 = vand.u32 4294901760, %v311_v18  ;;  %v784_v53 = vand.u32 4294901760, %v783_v46 }
  0xc3   : > { %557 = vmatpush.msra.mxu3 %v3508_v58  ;;  %700 = vmatpush.msrb.mxu2 %v3648_v50  ;;  %v759_v58 = vsub.f32 %v3636_v23, %v758_v38  ;;  %v313_v8 = vpop.xlane.xlu2 %312  ;;  %v765_v9 = vsub.f32 %v3657_v55, %v764_v61  ;;  %v776_v13 = vand.u32 4294901760, %v3668_v57 }
  0xc4   : > { %881 = vmatpush.msra.mxu1 %v3646_v28  ;;  %834 = vmatpush.msra.mxu0 %v3660_v59  ;;  %v3690_v15 = vand.u32 4294901760, %v313_v8  ;;  %v772_v31 = vand.u32 4294901760, %v771_v12  ;;  %v793_v35 = vsub.f32 %v311_v18, %v707_v20 }
  0xc5   : > { %628 = vmatmul.f32.gmra.mxu0 %v3482_v45  ;;  %702 = vmatpush.msrb.mxu2 %v3650_v54  ;;  %v760_v17 = vand.u32 4294901760, %v759_v58  ;;  %v766_v21 = vand.u32 4294901760, %v765_v9  ;;  %v777_v27 = vsub.f32 %v3668_v57, %v776_v13 }
  0xc6   : > { %525 = vmatmul.f32.vlgmr.msrb.gmra.mxu3 %v3557_v30  ;;  %883 = vmatpush.msra.mxu1 %v3648_v50  ;;  %v787_v29 = vsub.f32 %v313_v8, %v3690_v15  ;;  %v794_v40 = vand.u32 4294901760, %v793_v35 }
  0xc7   : > { %665 = vmatmul.f32.vlgmr.msrb.gmra.mxu1 %v3440_v24  ;;  %755 = vmatpush.msrb.mxu3 %v754_v60  ;;  %v778_v42 = vand.u32 4294901760, %v777_v27 }
  0xc8   : > { %837 = vmatpush.msra.mxu0 %v3668_v57  ;;  %704 = vmatpush.msrb.mxu2 %v3688_v14  ;;  %v788_v51 = vand.u32 4294901760, %v787_v29  ;;  %v795_v47 = vsub.f32 %v793_v35, %v794_v40 }
  0xc9   : > { %761 = vmatpush.msrb.mxu3 %v760_v17  ;;  %885 = vmatpush.msra.mxu1 %v3650_v54 }
  0xca   : > { %706 = vmatpush.msrb.mxu2 %v3690_v15  ;;  %840 = vmatpush.msra.mxu0 %v781_v26  ;;  %v789_v34 = vsub.f32 %v787_v29, %v788_v51  ;;  %v796_v57 = vand.u32 4294901760, %v795_v47 }
  0xcb   : > { %767 = vmatpush.msrb.mxu3 %v766_v21  ;;  %887 = vmatpush.msra.mxu1 %v3688_v14 }
  0xcc   : > { %708 = vmatpush.msrb.mxu2 %v707_v20  ;;  %v790_v60 = vand.u32 4294901760, %v789_v34  ;;  %843 = vmatpush.msra.mxu0 %v787_v29 }
  0xcd   : > { %773 = vmatpush.msrb.mxu3 %v772_v31  ;;  %632 = vmatmul.f32.gmra.mxu0 %v3539_v16 }
  0xce   : > { %530 = vmatmul.f32.gmra.mxu3 %v3581_v52  ;;  %714 = vmatmul.f32.vlgmr.msrb.gmra.mxu2 %v3527_v10 }
  0xcf   : > { %669 = vmatmul.f32.gmra.mxu1 %v3482_v45  ;;  %779 = vmatpush.msrb.mxu3 %v778_v42 }
  0xd0   : > { %928 = vmatpush.msra.mxu2 %v752_v43  ;;  %889 = vmatpush.msra.mxu1 %v3690_v15 }
  0xd1   : > { %785 = vmatpush.msrb.mxu3 %v784_v53  ;;  %846 = vmatpush.msra.mxu0 %v793_v35 }
  0xd2   : > { %932 = vmatpush.msra.mxu2 %v758_v38  ;;  %891 = vmatpush.msra.mxu1 %v707_v20 }
  0xd3   : > { %791 = vmatpush.msrb.mxu3 %v790_v60 }
  0xd4   : > { %936 = vmatpush.msra.mxu2 %v764_v61 }
  0xd5   : > { %797 = vmatpush.msrb.mxu3 %v796_v57  ;;  %636 = vmatmul.f32.gmra.mxu0 %v3569_v49 }
  0xd6   : > { %561 = vmatmul.f32.vlgmr.msra.gmra.mxu3 %v3480_v44  ;;  %722 = vmatmul.f32.gmra.mxu2 %v3563_v37 }
  0xd7   : > { %673 = vmatmul.f32.gmra.mxu1 %v3539_v16  ;;  %983 = vmatpush.msra.mxu3 %v3611_v41 }
  0xd8   : > { %940 = vmatpush.msra.mxu2 %v770_v62 }
  0xd9   : > { %985 = vmatpush.msra.mxu3 %v3620_v39 }
  0xda   : > { %944 = vmatpush.msra.mxu2 %v776_v13 }
  0xdb   : > { %987 = vmatpush.msra.mxu3 %v3646_v28 }
  0xdc   : > { %948 = vmatpush.msra.mxu2 %v782_v36 }
  0xdd   : > { %989 = vmatpush.msra.mxu3 %v3648_v50  ;;  %849 = vmatmul.f32.vlgmr.msra.gmra.mxu0 %v3456_v32 }
  0xde   : > { %567 = vmatmul.f32.gmra.mxu3 %v3530_v11  ;;  %730 = vmatmul.f32.gmra.mxu2 %v3591_v22 }
  0xdf   : > { %677 = vmatmul.f32.gmra.mxu1 %v3569_v49  ;;  %991 = vmatpush.msra.mxu3 %v3650_v54 }
  0xe0   : > { %952 = vmatpush.msra.mxu2 %v788_v51  ;;  %v331_v51 = vld [vmem:[%s4454_s2 + $0x8] sm:$0xff] }
  0xe1   : > { %993 = vmatpush.msra.mxu3 %v3688_v14  ;;  %v1077_v14 = vsel %vm1075_vm1, %v330_v63, 0  ;;  %v1080_v60 = vsel %vm1075_vm1, %v331_v51, 0 }
  0xe2   : > { %956 = vmatpush.msra.mxu2 %v794_v40  ;;  %v3759_v21 = vand.u32 4294901760, %v1077_v14 }
  0xe3   : > { %995 = vmatpush.msra.mxu3 %v3690_v15 }
  0xe4   : > { %v3769_v46 = vsub.f32 %v1077_v14, %v3759_v21 }
  0xe5   : > { %997 = vmatpush.msra.mxu3 %v707_v20  ;;  %854 = vmatmul.f32.gmra.mxu0 %v3504_v56 }
  0xe6   : > { %573 = vmatmul.f32.gmra.mxu3 %v3567_v48  ;;  %738 = vmatmul.f32.gmra.mxu2 %v3626_v33 }
  0xe7   : > { %895 = vmatmul.f32.vlgmr.msra.gmra.mxu1 %v3480_v44 }
  0xed   : > { %859 = vmatmul.f32.gmra.mxu0 %v3557_v30 }
  0xee   : > { %579 = vmatmul.f32.gmra.mxu3 %v3595_v25  ;;  %958 = vmatmul.f32.vlgmr.msra.gmra.mxu2 %v3440_v24 }
  0xef   : > { %901 = vmatmul.f32.gmra.mxu1 %v3530_v11 }
  0xf5   : > { %864 = vmatmul.f32.gmra.mxu0 %v3581_v52 }
  0xf6   : > { %799 = vmatmul.f32.vlgmr.msrb.gmra.mxu3 %v3440_v24  ;;  %962 = vmatmul.f32.gmra.mxu2 %v3482_v45 }
  0xf7   : > { %907 = vmatmul.f32.gmra.mxu1 %v3567_v48 }
  0xfe   : > { %803 = vmatmul.f32.gmra.mxu3 %v3482_v45  ;;  %966 = vmatmul.f32.gmra.mxu2 %v3539_v16 }
  0xff   : > { %913 = vmatmul.f32.gmra.mxu1 %v3595_v25 }
 0x106   : > { %807 = vmatmul.f32.gmra.mxu3 %v3539_v16  ;;  %970 = vmatmul.f32.gmra.mxu2 %v3569_v49 }
 0x10e   : > { %811 = vmatmul.f32.gmra.mxu3 %v3569_v49 }
 0x116   : > { %999 = vmatmul.f32.vlgmr.msra.gmra.mxu3 %v3440_v24 }
 0x11e   : > { %1003 = vmatmul.f32.gmra.mxu3 %v3482_v45 }
 0x126   : > { %1007 = vmatmul.f32.gmra.mxu3 %v3539_v16 }
 0x127   : > { %v381_v32 = vpop.f32.mrf.mxu3 }
 0x129   : > { %v466_v10 = vpop.f32.mrf.mxu0 }
 0x12a   : > { %v467_v23 = vadd.f32 %v466_v10, %v381_v32 }
 0x12b   : > { %v516_v25 = vpop.f32.mrf.mxu2 }
 0x12c   : > { %v517_v50 = vadd.f32 %v516_v25, %v467_v23 }
 0x12e   : > { %1011 = vmatmul.f32.gmra.mxu3 %v3569_v49 }
 0x12f   : > { %v389_v44 = vpop.f32.mrf.mxu3 }
 0x132   : > { %v470_v48 = vpop.f32.mrf.mxu0 }
 0x133   : > { %v521_v39 = vpop.f32.mrf.mxu2  ;;  %v471_v16 = vadd.f32 %v470_v48, %v389_v44  ;;  %v3781_v44 = vand.u32 4294901760, %v3769_v46 }
 0x134   : > { %v474_v30 = vpop.f32.mrf.mxu1 }
 0x135   : > { %v522_v49 = vadd.f32 %v521_v39, %v471_v16 }
 0x137   : > { %v397_v56 = vpop.f32.mrf.mxu3 }
 0x138   : > { %v475_v54 = vadd.f32 %v474_v30, %v397_v56  ;;  %v3783_v56 = vand.u32 4294901760, %v1080_v60 }
 0x13a   : > { %v625_v41 = vpop.f32.mrf.mxu0 }
 0x13c   : > { %v478_v52 = vpop.f32.mrf.mxu1 }
 0x141   : > { %v405_v11 = vpop.f32.mrf.mxu3 }
 0x142   : > { %v629_v45 = vpop.f32.mrf.mxu0  ;;  %v479_v15 = vadd.f32 %v478_v52, %v405_v11  ;;  %v332_v52 = vld [vmem:[%s4454_s2 + $0x10] sm:$0xff] }
 0x144   : > { %v666_v19 = vpop.f32.mrf.mxu1 }
 0x149   : > { %v526_v37 = vpop.f32.mrf.mxu3 }
 0x14a   : > { %v633_v55 = vpop.f32.mrf.mxu0  ;;  %v527_v59 = vadd.f32 %v526_v37, %v475_v54 }
 0x14c   : > { %v670_v33 = vpop.f32.mrf.mxu1 }
 0x151   : > { %v531_v22 = vpop.f32.mrf.mxu3  ;;  %v3751_v28 = vpop.f32.mrf.mxu2 }
 0x152   : > { %v532_v26 = vadd.f32 %v531_v22, %v479_v15  ;;  %v637_v36 = vpop.f32.mrf.mxu0 }
 0x154   : > { %v674_v58 = vpop.f32.mrf.mxu1 }
 0x159   : > { %v562_v24 = vpop.f32.mrf.mxu3  ;;  %v3757_v20 = vpop.f32.mrf.mxu2 }
 0x15a   : > { %v563_v61 = vadd.f32 %v562_v24, %v517_v50  ;;  %v850_v15 = vpop.f32.mrf.mxu0 }
 0x15c   : > { %v626_v12 = vadd.f32 %v625_v41, %v563_v61  ;;  %v678_v42 = vpop.f32.mrf.mxu1  ;;  %v1123_v41 = vsub.f32 %v3769_v46, %v3781_v44  ;;  %v333_v61 = vld [vmem:[%s4454_s2 + $0x18] sm:$0xff] }
 0x15d   : > { %v1086_v14 = vsel %vm1075_vm1, %v333_v61, 0 }
 0x15e   : > { %v667_v29 = vadd.f32 %v666_v19, %v626_v12  ;;  %v3803_v19 = vsub.f32 %v1080_v60, %v3783_v56  ;;  %v3811_v23 = vand.u32 4294901760, %v1123_v41 }
 0x160   : > { %v3771_v34 = vmul.f32 0.00390625, %v667_v29  ;;  %v3841_v29 = vand.u32 4294901760, %v1086_v14 }
 0x161   : > { %v568_v43 = vpop.f32.mrf.mxu3  ;;  %v3792_v48 = vpop.f32.mrf.mxu2 }
 0x162   : > { %v569_v38 = vadd.f32 %v568_v43, %v522_v49  ;;  %v3786_v10 = vand.u32 4294901760, %v3771_v34  ;;  %v3814_v49 = vand.u32 4294901760, %v3803_v19  ;;  %v3851_v60 = vsub.f32 %v1086_v14, %v3841_v29 }
 0x164   : > { %v630_v8 = vadd.f32 %v629_v45, %v569_v38  ;;  %v1216_v39 = vsub.f32 %v3771_v34, %v3786_v10  ;;  %v1131_v63 = vsub.f32 %v3803_v19, %v3814_v49  ;;  %v896_v51 = vpop.f32.mrf.mxu1 }
 0x166   : > { %v671_v17 = vadd.f32 %v670_v33, %v630_v8  ;;  %v1083_v33 = vsel %vm1075_vm1, %v332_v52, 0  ;;  %v855_v52 = vpop.f32.mrf.mxu0 }
 0x167   : > { %v3816_v50 = vand.u32 4294901760, %v1083_v33 }
 0x168   : > { %v3766_v27 = vmul.f32 0.00390625, %v671_v17 }
 0x169   : > { %v574_v62 = vpop.f32.mrf.mxu3  ;;  %v3828_v8 = vpop.f32.mrf.mxu2 }
 0x16a   : > { %v575_v9 = vadd.f32 %v574_v62, %v527_v59  ;;  %v3778_v57 = vand.u32 4294901760, %v3766_v27 }
 0x16c   : > { %v634_v13 = vadd.f32 %v633_v55, %v575_v9  ;;  %v1210_v25 = vsub.f32 %v3766_v27, %v3778_v57  ;;  %v1217_v55 = vand.u32 4294901760, %v1216_v39  ;;  %v3831_v9 = vsub.f32 %v1083_v33, %v3816_v50  ;;  %v902_v33 = vpop.f32.mrf.mxu1 }
 0x16e   : > { %v675_v18 = vadd.f32 %v674_v58, %v634_v13  ;;  %v1211_v43 = vand.u32 4294901760, %v1210_v25  ;;  %v1218_v13 = vsub.f32 %v1216_v39, %v1217_v55  ;;  %v860_v61 = vpop.f32.mrf.mxu0 }
 0x170   : > { %v3761_v31 = vmul.f32 0.00390625, %v675_v18  ;;  %v1212_v58 = vsub.f32 %v1210_v25, %v1211_v43  ;;  %v3836_v18 = vand.u32 4294901760, %v1131_v63 }
 0x171   : > { %v580_v35 = vpop.f32.mrf.mxu3 }
 0x172   : > { %v581_v40 = vadd.f32 %v580_v35, %v532_v26  ;;  %v3774_v47 = vand.u32 4294901760, %v3761_v31  ;;  %v1213_v17 = vand.u32 4294901760, %v1212_v58  ;;  %v3839_v26 = vand.u32 4294901760, %v3831_v9 }
 0x173   : > { %v1219_v35 = vand.u32 4294901760, %v1218_v13 }
 0x174   : > { %v638_v53 = vadd.f32 %v637_v36, %v581_v40  ;;  %v1204_v30 = vsub.f32 %v3761_v31, %v3774_v47  ;;  %v334_v40 = vld [vmem:[%s4454_s2 + $0x20] sm:$0xff] }
 0x176   : > { %v679_v32 = vadd.f32 %v678_v42, %v638_v53  ;;  %v1205_v45 = vand.u32 4294901760, %v1204_v30  ;;  %v1139_v53 = vsub.f32 %v3831_v9, %v3839_v26 }
 0x178   : > { %v3788_v11 = vmul.f32 0.00390625, %v679_v32  ;;  %v1206_v38 = vsub.f32 %v1204_v30, %v1205_v45  ;;  %v1089_v32 = vsel %vm1075_vm1, %v334_v40, 0 }
 0x179   : > { %v800_v37 = vpop.f32.mrf.mxu3  ;;  %v3862_v41 = vand.u32 4294901760, %v1089_v32 }
 0x17a   : > { %v1112_v22 = vand.u32 4294901760, %v3788_v11  ;;  %v1207_v12 = vand.u32 4294901760, %v1206_v38  ;;  %v801_v42 = vadd.f32 %v800_v37, %v3751_v28  ;;  %v3857_v37 = vand.u32 4294901760, %v1139_v53 }
 0x17c   : > { %v1198_v24 = vsub.f32 %v3788_v11, %v1112_v22  ;;  %1113 = vmatpush.msrb.mxu1 %v1112_v22  ;;  %1332 = vmatpush.msrb.mxu3 %v1112_v22  ;;  %v851_v28 = vadd.f32 %v850_v15, %v801_v42 }
 0x17e   : > { %1115 = vmatpush.msrb.mxu1 %v3774_v47  ;;  %1268 = vmatpush.msrb.mxu2 %v1198_v24  ;;  %v1199_v16 = vand.u32 4294901760, %v1198_v24 }
 0x17f   : > { %1334 = vmatpush.msrb.mxu3 %v3774_v47 }
 0x180   : > { %1117 = vmatpush.msrb.mxu1 %v3778_v57  ;;  %1271 = vmatpush.msrb.mxu2 %v1204_v30  ;;  %v1200_v54 = vsub.f32 %v1198_v24, %v1199_v16  ;;  %v959_v30 = vpop.f32.mrf.mxu2  ;;  %v335_v24 = vld [vmem:[%s4454_s2 + $0x28] sm:$0xff] }
 0x181   : > { %1336 = vmatpush.msrb.mxu3 %v3778_v57  ;;  %v804_v59 = vpop.f32.mrf.mxu3 }
 0x182   : > { %1119 = vmatpush.msrb.mxu1 %v3786_v10  ;;  %1274 = vmatpush.msrb.mxu2 %v1210_v25  ;;  %v1201_v62 = vand.u32 4294901760, %v1200_v54  ;;  %v3860_v25 = vand.u32 4294901760, %v3851_v60 }
 0x183   : > { %1338 = vmatpush.msrb.mxu3 %v3786_v10  ;;  %1125 = vmatmul.f32.vlgmr.msrb.gmra.mxu1 %v3811_v23 }
 0x184   : > { %1202 = vmatpush.msra.mxu1 %v1201_v62  ;;  %1277 = vmatpush.msrb.mxu2 %v1216_v39  ;;  %v805_v39 = vadd.f32 %v804_v59, %v3757_v20  ;;  %v336_v62 = vld [vmem:[%s4454_s2 + $0x30] sm:$0xff] }
 0x185   : > { %1280 = vmatmul.f32.vlgmr.msrb.gmra.mxu2 %v3769_v46  ;;  %1342 = vmatmul.f32.vlgmr.msrb.gmra.mxu3 %v3781_v44  ;;  %v1095_v15 = vsel %vm1075_vm1, %v336_v62, 0 }
 0x186   : > { %1403 = vmatpush.msra.mxu2 %v1199_v16  ;;  %1208 = vmatpush.msra.mxu1 %v1207_v12  ;;  %v3874_v16 = vsub.f32 %v1089_v32, %v3862_v41  ;;  %v856_v20 = vadd.f32 %v855_v52, %v805_v39  ;;  %v3906_v53 = vand.u32 4294901760, %v1095_v15  ;;  %v337_v52 = vld [vmem:[%s4454_s2 + $0x38] sm:$0xff] }
 0x188   : > { %1407 = vmatpush.msra.mxu2 %v1205_v45  ;;  %1214 = vmatpush.msra.mxu1 %v1213_v17  ;;  %v1147_v45 = vsub.f32 %v3851_v60, %v3860_v25  ;;  %v3882_v38 = vand.u32 4294901760, %v3874_v16  ;;  %v903_v12 = vadd.f32 %v902_v33, %v856_v20  ;;  %v3916_v33 = vsub.f32 %v1095_v15, %v3906_v53 }
 0x189   : > { %v808_v36 = vpop.f32.mrf.mxu3  ;;  %v1098_v20 = vsel %vm1075_vm1, %v337_v52, 0 }
 0x18a   : > { %1411 = vmatpush.msra.mxu2 %v1211_v43  ;;  %1220 = vmatpush.msra.mxu1 %v1219_v35  ;;  %v3879_v54 = vand.u32 4294901760, %v1147_v45  ;;  %v809_v58 = vadd.f32 %v808_v36, %v3792_v48  ;;  %v1155_v13 = vsub.f32 %v3874_v16, %v3882_v38  ;;  %v908_v35 = vpop.f32.mrf.mxu1  ;;  %v1019_v36 = vmul.f32 %v3771_v34, %v3771_v34  ;;  %v865_v34 = vpop.f32.mrf.mxu0 }
 0x18b   : > { %1133 = vmatmul.f32.gmra.mxu1 %v3836_v18 }
 0x18c   : > { %1415 = vmatpush.msra.mxu2 %v1217_v55  ;;  %1462 = vmatpush.msrb.mxu1 %v1112_v22  ;;  %v861_v48 = vadd.f32 %v860_v61, %v809_v58  ;;  %v3901_v40 = vand.u32 4294901760, %v1155_v13  ;;  %v3926_v58 = vand.u32 4294901760, %v3916_v33 }
 0x18d   : > { %1285 = vmatmul.f32.gmra.mxu2 %v3803_v19  ;;  %1348 = vmatmul.f32.gmra.mxu3 %v3814_v49 }
 0x18e   : > { %1464 = vmatpush.msrb.mxu1 %v3774_v47  ;;  %v897_v47 = vadd.f32 %v896_v51, %v851_v28 }
 0x190   : > { %1466 = vmatpush.msrb.mxu1 %v3778_v57  ;;  %v1092_v57 = vsel %vm1075_vm1, %v335_v24, 0  ;;  %v960_v43 = vadd.f32 %v959_v30, %v897_v47  ;;  %v909_v47 = vadd.f32 %v908_v35, %v861_v48  ;;  %v1171_v48 = vsub.f32 %v3916_v33, %v3926_v58 }
 0x191   : > { %v812_v22 = vpop.f32.mrf.mxu3  ;;  %v3884_v55 = vand.u32 4294901760, %v1092_v57 }
 0x192   : > { %1468 = vmatpush.msrb.mxu1 %v3786_v10  ;;  %v963_v10 = vpop.f32.mrf.mxu2  ;;  %v813_v24 = vadd.f32 %v812_v22, %v3828_v8  ;;  %v914_v62 = vpop.f32.mrf.mxu1 }
 0x193   : > { %1141 = vmatmul.f32.gmra.mxu1 %v3857_v37  ;;  %v3894_v14 = vsub.f32 %v1092_v57, %v3884_v55  ;;  %v964_v51 = vadd.f32 %v963_v10, %v903_v12 }
 0x195   : > { %1290 = vmatmul.f32.gmra.mxu2 %v3831_v9  ;;  %1354 = vmatmul.f32.gmra.mxu3 %v3839_v26  ;;  %v3904_v42 = vand.u32 4294901760, %v3894_v14 }
 0x197   : > { %v1163_v45 = vsub.f32 %v3894_v14, %v3904_v42 }
 0x199   : > { %v1000_v59 = vpop.f32.mrf.mxu3  ;;  %v3923_v61 = vand.u32 4294901760, %v1163_v45 }
 0x19a   : > { %v1001_v63 = vadd.f32 %v1000_v59, %v960_v43  ;;  %v967_v28 = vpop.f32.mrf.mxu2  ;;  %v1020_v43 = vmul.f32 %v3766_v27, %v3766_v27  ;;  %v866_v59 = vadd.f32 %v865_v34, %v813_v24  ;;  %v3946_v24 = vand.u32 4294901760, %v1171_v48 }
 0x19b   : > { %1149 = vmatmul.f32.gmra.mxu1 %v3879_v54  ;;  %v968_v22 = vadd.f32 %v967_v28, %v909_v47 }
 0x19c   : > { %v1015_v17 = vmul.f32 0.00390625, %v1001_v63  ;;  %v3928_v63 = vand.u32 4294901760, %v1098_v20  ;;  %v915_v35 = vadd.f32 %v914_v62, %v866_v59 }
 0x19d   : > { %1295 = vmatmul.f32.gmra.mxu2 %v3851_v60  ;;  %1360 = vmatmul.f32.gmra.mxu3 %v3860_v25 }
 0x19e   : > { %v1023_v32 = vsub.f32 %v1015_v17, %v1019_v36  ;;  %v3938_v36 = vsub.f32 %v1098_v20, %v3928_v63 }
 0x1a0   : > { %v1027_v10 = vmax.f32 %v1023_v32, 0.0 }
 0x1a1   : > { %v1004_v30 = vpop.f32.mrf.mxu3 }
 0x1a2   : > { %v1005_v39 = vadd.f32 %v1004_v30, %v964_v51  ;;  %v3930_v27 = vadd.f32 1e-05, %v1027_v10  ;;  %v971_v51 = vpop.f32.mrf.mxu2  ;;  %v1021_v30 = vmul.f32 %v3761_v31, %v3761_v31 }
 0x1a3   : > { %1157 = vmatmul.f32.gmra.mxu1 %v3901_v40  ;;  %v972_v52 = vadd.f32 %v971_v51, %v915_v35 }
 0x1a4   : > { %v1016_v57 = vmul.f32 0.00390625, %v1005_v39  ;;  %v3949_v39 = vand.u32 4294901760, %v3938_v36  ;;  %vm1041_vm9 = vweird.f32 %v3930_v27 }
 0x1a5   : > { %1300 = vmatmul.f32.gmra.mxu2 %v3874_v16  ;;  %1366 = vmatmul.f32.gmra.mxu3 %v3882_v38 }
 0x1a6   : > { %v1024_v8 = vsub.f32 %v1016_v57, %v1020_v43  ;;  %v1179_v31 = vsub.f32 %v3938_v36, %v3949_v39 }
 0x1a8   : > { %v1028_v12 = vmax.f32 %v1024_v8, 0.0 }
 0x1a9   : > { %v1008_v13 = vpop.f32.mrf.mxu3 }
 0x1aa   : > { %v3932_v15 = vadd.f32 1e-05, %v1028_v12  ;;  %v1009_v17 = vadd.f32 %v1008_v13, %v968_v22  ;;  %v1022_v22 = vmul.f32 %v3788_v11, %v3788_v11  ;;  %v3960_v12 = vand.u32 4294901760, %v1179_v31 }
 0x1ab   : > { %1165 = vmatmul.f32.gmra.mxu1 %v3923_v61 }
 0x1ac   : > { %3122 = vrsqrt.f32 %v3932_v15  ;;  %v1017_v32 = vmul.f32 0.00390625, %v1009_v17  ;;  %vm1051_vm6 = vweird.f32 %v3932_v15 }
 0x1ad   : > { %3124 = vrsqrt.f32 %v3930_v27  ;;  %1305 = vmatmul.f32.gmra.mxu2 %v3894_v14  ;;  %1372 = vmatmul.f32.gmra.mxu3 %v3904_v42 }
 0x1ae   : > { %v1025_v28 = vsub.f32 %v1017_v32, %v1021_v30 }
 0x1b0   : > { %v1029_v47 = vmax.f32 %v1025_v28, 0.0 }
 0x1b1   : > { %v1012_v34 = vpop.f32.mrf.mxu3 }
 0x1b2   : > { %v3123_v45 = vpop.eup %3122  ;;  %v1033_v57 = vadd.f32 1e-05, %v1029_v47  ;;  %v1013_v43 = vadd.f32 %v1012_v34, %v972_v52 }
 0x1b3   : > { %v3125_v20 = vpop.eup %3124  ;;  %1173 = vmatmul.f32.gmra.mxu1 %v3946_v24  ;;  %v1046_v10 = vmul.f32 %v3123_v45, %v3932_v15  ;;  %vm1052_vm4 = vweird.f32 %v3123_v45 }
 0x1b4   : > { %3126 = vrsqrt.f32 %v1033_v57  ;;  %v1018_v8 = vmul.f32 0.00390625, %v1013_v43  ;;  %v1036_v59 = vmul.f32 %v3125_v20, %v3930_v27  ;;  %vm1061_vm3 = vweird.f32 %v1033_v57  ;;  %vm1053_vm8 = vmor %vm1051_vm6, %vm1052_vm4 }
 0x1b5   : > { %1310 = vmatmul.f32.gmra.mxu2 %v3916_v33  ;;  %1378 = vmatmul.f32.gmra.mxu3 %v3926_v58  ;;  %v1047_v13 = vmul.f32 %v3123_v45, %v1046_v10  ;;  %vm1042_vm7 = vweird.f32 %v3125_v20 }
 0x1b6   : > { %v1026_v62 = vsub.f32 %v1018_v8, %v1022_v22  ;;  %v1037_v51 = vmul.f32 %v3125_v20, %v1036_v59  ;;  %vm1043_vm11 = vmor %vm1041_vm9, %vm1042_vm7 }
 0x1b7   : > { %v1048_v30 = vmul.f32 0.5, %v1047_v13 }
 0x1b8   : > { %v1030_v17 = vmax.f32 %v1026_v62, 0.0  ;;  %v1038_v28 = vmul.f32 0.5, %v1037_v51 }
 0x1b9   : > { %v1049_v47 = vsub.f32 1.5, %v1048_v30 }
 0x1ba   : > { %v3127_v35 = vpop.eup %3126  ;;  %v1034_v48 = vadd.f32 1e-05, %v1030_v17  ;;  %v1039_v31 = vsub.f32 1.5, %v1038_v28 }
 0x1bb   : > { %v1056_v32 = vmul.f32 %v3127_v35, %v1033_v57  ;;  %1181 = vmatmul.f32.gmra.mxu1 %v3960_v12  ;;  %vm1062_vm2 = vweird.f32 %v3127_v35  ;;  %v1050_v22 = vmul.f32 %v3123_v45, %v1049_v47 }
 0x1bc   : > { %3128 = vrsqrt.f32 %v1034_v48  ;;  %vm1063_vm5 = vmor %vm1061_vm3, %vm1062_vm2  ;;  %v1040_v13 = vmul.f32 %v3125_v20, %v1039_v31  ;;  %vm1071_vm12 = vweird.f32 %v1034_v48 }
 0x1bd   : > { %v1057_v11 = vmul.f32 %v3127_v35, %v1056_v32  ;;  %1315 = vmatmul.f32.gmra.mxu2 %v3938_v36  ;;  %1384 = vmatmul.f32.gmra.mxu3 %v3949_v39  ;;  %v1054_v51 = vsel %vm1053_vm8, %v3123_v45, %v1050_v22 }
 0x1be   : > { %v1044_v57 = vsel %vm1043_vm11, %v3125_v20, %v1040_v13  ;;  %v1518_v28 = vand.u32 4294901760, %v1054_v51 }
 0x1bf   : > { %v1058_v52 = vmul.f32 0.5, %v1057_v11 }
 0x1c1   : > { %v1059_v34 = vsub.f32 1.5, %v1058_v52  ;;  %v1520_v52 = vand.u32 4294901760, %v1044_v57 }
 0x1c2   : > { %v3129_v43 = vpop.eup %3128 }
 0x1c3   : > { %v1066_v10 = vmul.f32 %v3129_v43, %v1034_v48  ;;  %1222 = vmatmul.f32.vlgmr.msra.gmra.mxu1 %v3759_v21  ;;  %v1060_v8 = vmul.f32 %v3127_v35, %v1059_v34  ;;  %vm1072_vm10 = vweird.f32 %v3129_v43  ;;  %v1612_v34 = vsub.f32 %v1054_v51, %v1518_v28 }
 0x1c4   : > { %vm1073_vm13 = vmor %vm1071_vm12, %vm1072_vm10  ;;  %v1618_v45 = vsub.f32 %v1044_v57, %v1520_v52 }
 0x1c5   : > { %v1067_v59 = vmul.f32 %v3129_v43, %v1066_v10  ;;  %1417 = vmatmul.f32.vlgmr.msra.gmra.mxu2 %v3759_v21  ;;  %v1064_v62 = vsel %vm1063_vm5, %v3127_v35, %v1060_v8  ;;  %v1613_v48 = vand.u32 4294901760, %v1612_v34 }
 0x1c6   : > { %v1516_v30 = vand.u32 4294901760, %v1064_v62  ;;  %v1619_v8 = vand.u32 4294901760, %v1618_v45 }
 0x1c7   : > { %v1068_v17 = vmul.f32 0.5, %v1067_v59  ;;  %v1614_v59 = vsub.f32 %v1612_v34, %v1613_v48 }
 0x1c8   : > { %v1606_v35 = vsub.f32 %v1064_v62, %v1516_v30  ;;  %v1620_v13 = vsub.f32 %v1618_v45, %v1619_v8 }
 0x1c9   : > { %v1069_v32 = vsub.f32 1.5, %v1068_v17  ;;  %v1615_v17 = vand.u32 4294901760, %v1614_v59 }
 0x1ca   : > { %v1607_v31 = vand.u32 4294901760, %v1606_v35  ;;  %v1621_v51 = vand.u32 4294901760, %v1620_v13 }
 0x1cb   : > { %1226 = vmatmul.f32.gmra.mxu1 %v3783_v56  ;;  %v1070_v11 = vmul.f32 %v3129_v43, %v1069_v32 }
 0x1cd   : > { %1421 = vmatmul.f32.gmra.mxu2 %v3783_v56  ;;  %v1074_v15 = vsel %vm1073_vm13, %v3129_v43, %v1070_v11  ;;  %v1608_v43 = vsub.f32 %v1606_v35, %v1607_v31 }
 0x1ce   : > { %v1514_v47 = vand.u32 4294901760, %v1074_v15 }
 0x1cf   : > { %v1609_v62 = vand.u32 4294901760, %v1608_v43 }
 0x1d0   : > { %1515 = vmatpush.msrb.mxu2 %v1514_v47  ;;  %1734 = vmatpush.msra.mxu1 %v1514_v47  ;;  %v1600_v27 = vsub.f32 %v1074_v15, %v1514_v47 }
 0x1d2   : > { %1517 = vmatpush.msrb.mxu2 %v1516_v30  ;;  %1670 = vmatpush.msrb.mxu0 %v1600_v27  ;;  %v1601_v20 = vand.u32 4294901760, %v1600_v27 }
 0x1d3   : > { %1736 = vmatpush.msra.mxu1 %v1516_v30 }
 0x1d4   : > { %1230 = vmatmul.f32.gmra.mxu1 %v3816_v50  ;;  %1519 = vmatpush.msrb.mxu2 %v1518_v28  ;;  %v1602_v10 = vsub.f32 %v1600_v27, %v1601_v20 }
 0x1d5   : > { %1673 = vmatpush.msrb.mxu0 %v1606_v35  ;;  %1738 = vmatpush.msra.mxu1 %v1518_v28 }
 0x1d6   : > { %1425 = vmatmul.f32.gmra.mxu2 %v3816_v50  ;;  %v1603_v22 = vand.u32 4294901760, %v1602_v10 }
 0x1d7   : > { %1521 = vmatpush.msrb.mxu2 %v1520_v52  ;;  %1676 = vmatpush.msrb.mxu0 %v1612_v34 }
 0x1d8   : > { %1740 = vmatpush.msra.mxu1 %v1520_v52  ;;  %1604 = vmatpush.msra.mxu3 %v1603_v22 }
 0x1d9   : > { %1805 = vmatpush.msra.mxu2 %v1601_v20  ;;  %1679 = vmatpush.msrb.mxu0 %v1618_v45 }
 0x1da   : > { %1682 = vmatmul.f32.vlgmr.msrb.gmra.mxu0 %v3769_v46  ;;  %1610 = vmatpush.msra.mxu3 %v1609_v62 }
 0x1db   : > { %1809 = vmatpush.msra.mxu2 %v1607_v31 }
 0x1dc   : > { %1234 = vmatmul.f32.gmra.mxu1 %v3841_v29  ;;  %1616 = vmatpush.msra.mxu3 %v1615_v17 }
 0x1dd   : > { %1813 = vmatpush.msra.mxu2 %v1613_v48 }
 0x1de   : > { %1429 = vmatmul.f32.gmra.mxu2 %v3841_v29  ;;  %1622 = vmatpush.msra.mxu3 %v1621_v51 }
 0x1df   : > { %1817 = vmatpush.msra.mxu2 %v1619_v8  ;;  %1624 = vmatmul.f32.vlgmr.msra.gmra.mxu3 %v3759_v21 }
 0x1e0   : > { %1864 = vmatpush.msrb.mxu3 %v1514_v47 }
 0x1e2   : > { %1866 = vmatpush.msrb.mxu3 %v1516_v30  ;;  %1687 = vmatmul.f32.gmra.mxu0 %v3803_v19 }
 0x1e4   : > { %1238 = vmatmul.f32.gmra.mxu1 %v3862_v41  ;;  %1868 = vmatpush.msrb.mxu3 %v1518_v28 }
 0x1e6   : > { %1433 = vmatmul.f32.gmra.mxu2 %v3862_v41  ;;  %1870 = vmatpush.msrb.mxu3 %v1520_v52 }
 0x1e7   : > { %1628 = vmatmul.f32.gmra.mxu3 %v3783_v56 }
 0x1ea   : > { %1692 = vmatmul.f32.gmra.mxu0 %v3831_v9 }
 0x1ec   : > { %1242 = vmatmul.f32.gmra.mxu1 %v3884_v55 }
 0x1ee   : > { %1437 = vmatmul.f32.gmra.mxu2 %v3884_v55 }
 0x1ef   : > { %1632 = vmatmul.f32.gmra.mxu3 %v3816_v50 }
 0x1f2   : > { %1697 = vmatmul.f32.gmra.mxu0 %v3851_v60 }
 0x1f4   : > { %1246 = vmatmul.f32.gmra.mxu1 %v3906_v53 }
 0x1f6   : > { %1441 = vmatmul.f32.gmra.mxu2 %v3906_v53 }
 0x1f7   : > { %1636 = vmatmul.f32.gmra.mxu3 %v3841_v29 }
 0x1fa   : > { %1702 = vmatmul.f32.gmra.mxu0 %v3874_v16 }
 0x1fc   : > { %1250 = vmatmul.f32.gmra.mxu1 %v3928_v63 }
 0x1fe   : > { %1445 = vmatmul.f32.gmra.mxu2 %v3928_v63 }
 0x1ff   : > { %1640 = vmatmul.f32.gmra.mxu3 %v3862_v41 }
 0x200   : > { %v1126_v46 = vpop.f32.mrf.mxu1 }
 0x202   : > { %1707 = vmatmul.f32.gmra.mxu0 %v3894_v14 }
 0x204   : > { %1470 = vmatmul.f32.vlgmr.msrb.gmra.mxu1 %v3759_v21 }
 0x206   : > { %1527 = vmatmul.f32.vlgmr.msrb.gmra.mxu2 %v3811_v23 }
 0x207   : > { %1644 = vmatmul.f32.gmra.mxu3 %v3884_v55 }
 0x208   : > { %v1134_v19 = vpop.f32.mrf.mxu1  ;;  %v1281_v9 = vpop.f32.mrf.mxu2 }
 0x209   : > { %v1343_v32 = vpop.f32.mrf.mxu3 }
 0x20a   : > { %1712 = vmatmul.f32.gmra.mxu0 %v3916_v33 }
 0x20c   : > { %1474 = vmatmul.f32.gmra.mxu1 %v3783_v56 }
 0x20e   : > { %1535 = vmatmul.f32.gmra.mxu2 %v3836_v18 }
 0x20f   : > { %1648 = vmatmul.f32.gmra.mxu3 %v3906_v53 }
 0x210   : > { %v1142_v60 = vpop.f32.mrf.mxu1  ;;  %v1286_v16 = vpop.f32.mrf.mxu2 }
 0x212   : > { %1717 = vmatmul.f32.gmra.mxu0 %v3938_v36 }
 0x214   : > { %1478 = vmatmul.f32.gmra.mxu1 %v3816_v50 }
 0x216   : > { %1543 = vmatmul.f32.gmra.mxu2 %v3857_v37  ;;  %v1349_v37 = vpop.f32.mrf.mxu3 }
 0x217   : > { %1652 = vmatmul.f32.gmra.mxu3 %v3928_v63 }
 0x218   : > { %v1150_v23 = vpop.f32.mrf.mxu1  ;;  %v1291_v14 = vpop.f32.mrf.mxu2 }
 0x21c   : > { %1482 = vmatmul.f32.gmra.mxu1 %v3841_v29 }
 0x21e   : > { %1551 = vmatmul.f32.gmra.mxu2 %v3879_v54  ;;  %v4017_v11 = vpop.f32.mrf.mxu3 }
 0x21f   : > { %1872 = vmatmul.f32.vlgmr.msrb.gmra.mxu3 %v3759_v21 }
 0x220   : > { %v1158_v33 = vpop.f32.mrf.mxu1  ;;  %v1296_v18 = vpop.f32.mrf.mxu2 }
 0x224   : > { %1486 = vmatmul.f32.gmra.mxu1 %v3862_v41 }
 0x226   : > { %1559 = vmatmul.f32.gmra.mxu2 %v3901_v40  ;;  %v4024_v15 = vpop.f32.mrf.mxu3 }
 0x227   : > { %1876 = vmatmul.f32.gmra.mxu3 %v3783_v56 }
 0x228   : > { %v1166_v36 = vpop.f32.mrf.mxu1  ;;  %v1301_v30 = vpop.f32.mrf.mxu2 }
 0x22c   : > { %1490 = vmatmul.f32.gmra.mxu1 %v3884_v55 }
 0x22e   : > { %1567 = vmatmul.f32.gmra.mxu2 %v3923_v61  ;;  %v4032_v34 = vpop.f32.mrf.mxu3 }
 0x22f   : > { %1880 = vmatmul.f32.gmra.mxu3 %v3816_v50 }
 0x230   : > { %v4013_v57 = vpop.f32.mrf.mxu1  ;;  %v1306_v54 = vpop.f32.mrf.mxu2 }
 0x234   : > { %1494 = vmatmul.f32.gmra.mxu1 %v3906_v53 }
 0x236   : > { %1575 = vmatmul.f32.gmra.mxu2 %v3946_v24  ;;  %v4037_v43 = vpop.f32.mrf.mxu3 }
 0x237   : > { %1884 = vmatmul.f32.gmra.mxu3 %v3841_v29 }
 0x238   : > { %v4020_v40 = vpop.f32.mrf.mxu1  ;;  %v1311_v28 = vpop.f32.mrf.mxu2 }
 0x23c   : > { %1498 = vmatmul.f32.gmra.mxu1 %v3928_v63 }
 0x23e   : > { %1583 = vmatmul.f32.gmra.mxu2 %v3960_v12  ;;  %v4043_v13 = vpop.f32.mrf.mxu3 }
 0x23f   : > { %1888 = vmatmul.f32.gmra.mxu3 %v3862_v41 }
 0x240   : > { %v1223_v61 = vpop.f32.mrf.mxu1  ;;  %v4027_v35 = vpop.f32.mrf.mxu2 }
 0x241   : > { %v1224_v52 = vadd.f32 %v1223_v61, %v1126_v46 }
 0x243   : > { %v1282_v47 = vadd.f32 %v1281_v9, %v1224_v52 }
 0x244   : > { %1744 = vmatmul.f32.vlgmr.msra.gmra.mxu1 %v3781_v44 }
 0x245   : > { %v1344_v24 = vadd.f32 %v1343_v32, %v1282_v47 }
 0x246   : > { %1819 = vmatmul.f32.vlgmr.msra.gmra.mxu2 %v3759_v21 }
 0x247   : > { %1892 = vmatmul.f32.gmra.mxu3 %v3884_v55 }
 0x248   : > { %v1227_v27 = vpop.f32.mrf.mxu1  ;;  %v1418_v45 = vpop.f32.mrf.mxu2 }
 0x249   : > { %v1228_v31 = vadd.f32 %v1227_v27, %v1134_v19  ;;  %v1419_v20 = vadd.f32 %v1418_v45, %v1344_v24  ;;  %v4048_v19 = vpop.f32.mrf.mxu3 }
 0x24b   : > { %v1287_v12 = vadd.f32 %v1286_v16, %v1228_v31 }
 0x24c   : > { %1750 = vmatmul.f32.gmra.mxu1 %v3814_v49 }
 0x24d   : > { %v1350_v48 = vadd.f32 %v1349_v37, %v1287_v12 }
 0x24e   : > { %1823 = vmatmul.f32.gmra.mxu2 %v3783_v56 }
 0x24f   : > { %1896 = vmatmul.f32.gmra.mxu3 %v3906_v53 }
 0x250   : > { %v1422_v10 = vpop.f32.mrf.mxu2 }
 0x251   : > { %v1231_v44 = vpop.f32.mrf.mxu1  ;;  %v1423_v8 = vadd.f32 %v1422_v10, %v1350_v48 }
 0x252   : > { %v1232_v21 = vadd.f32 %v1231_v44, %v1142_v60 }
 0x254   : > { %1756 = vmatmul.f32.gmra.mxu1 %v3839_v26  ;;  %v1292_v22 = vadd.f32 %v1291_v14, %v1232_v21 }
 0x256   : > { %1827 = vmatmul.f32.gmra.mxu2 %v3816_v50 }
 0x257   : > { %1900 = vmatmul.f32.gmra.mxu3 %v3928_v63 }
 0x259   : > { %v1235_v59 = vpop.f32.mrf.mxu1  ;;  %v1426_v62 = vpop.f32.mrf.mxu2 }
 0x25a   : > { %v1236_v49 = vadd.f32 %v1235_v59, %v1150_v23 }
 0x25c   : > { %1762 = vmatmul.f32.gmra.mxu1 %v3860_v25  ;;  %v1297_v56 = vadd.f32 %v1296_v18, %v1236_v49 }
 0x25e   : > { %1831 = vmatmul.f32.gmra.mxu2 %v3841_v29  ;;  %v1362_v27 = vadd.f32 %v4024_v15, %v1297_v56 }
 0x261   : > { %v1239_v17 = vpop.f32.mrf.mxu1  ;;  %v1430_v51 = vpop.f32.mrf.mxu2 }
 0x262   : > { %v1240_v46 = vadd.f32 %v1239_v17, %v1158_v33  ;;  %v1625_v25 = vpop.f32.mrf.mxu3  ;;  %v3277_v33 = vmov 0   ;;  %v1431_v45 = vadd.f32 %v1430_v51, %v1362_v27 }
 0x263   : > { %3119 = vset.pattern.permute.xlu1 %v3277_v33  ;;  %3120 = vset.pattern.permute.xlu0 %v3277_v33 }
 0x264   : > { %1768 = vmatmul.f32.gmra.mxu1 %v3882_v38  ;;  %v1302_v26 = vadd.f32 %v1301_v30, %v1240_v46  ;;  %3121 = vset.pattern.permute.xlu2 %v3277_v33 }
 0x266   : > { %1835 = vmatmul.f32.gmra.mxu2 %v3862_v41  ;;  %v1368_v10 = vadd.f32 %v4032_v34, %v1302_v26 }
 0x269   : > { %v1243_v50 = vpop.f32.mrf.mxu1  ;;  %v1434_v9 = vpop.f32.mrf.mxu2 }
 0x26a   : > { %v1244_v60 = vadd.f32 %v1243_v50, %v1166_v36  ;;  %v1629_v38 = vpop.f32.mrf.mxu3  ;;  %v1435_v44 = vadd.f32 %v1434_v9, %v1368_v10 }
 0x26c   : > { %1774 = vmatmul.f32.gmra.mxu1 %v3904_v42  ;;  %v1307_v16 = vadd.f32 %v1306_v54, %v1244_v60 }
 0x26e   : > { %1839 = vmatmul.f32.gmra.mxu2 %v3884_v55 }
 0x271   : > { %v1247_v29 = vpop.f32.mrf.mxu1  ;;  %v1438_v23 = vpop.f32.mrf.mxu2 }
 0x272   : > { %v1248_v14 = vadd.f32 %v1247_v29, %v4013_v57  ;;  %v1633_v36 = vpop.f32.mrf.mxu3 }
 0x274   : > { %1780 = vmatmul.f32.gmra.mxu1 %v3926_v58  ;;  %v1312_v41 = vadd.f32 %v1311_v28, %v1248_v14 }
 0x276   : > { %1843 = vmatmul.f32.gmra.mxu2 %v3906_v53  ;;  %v1380_v46 = vadd.f32 %v4043_v13, %v1312_v41 }
 0x279   : > { %v1251_v42 = vpop.f32.mrf.mxu1  ;;  %v1442_v18 = vpop.f32.mrf.mxu2 }
 0x27a   : > { %v1252_v55 = vadd.f32 %v1251_v42, %v4020_v40  ;;  %v1637_v61 = vpop.f32.mrf.mxu3  ;;  %v1356_v40 = vadd.f32 %v4017_v11, %v1292_v22  ;;  %v1443_v50 = vadd.f32 %v1442_v18, %v1380_v46 }
 0x27c   : > { %1786 = vmatmul.f32.gmra.mxu1 %v3949_v39  ;;  %v1317_v32 = vadd.f32 %v4027_v35, %v1252_v55  ;;  %v1427_v52 = vadd.f32 %v1426_v62, %v1356_v40  ;;  %v1374_v62 = vadd.f32 %v4037_v43, %v1307_v16 }
 0x27e   : > { %1847 = vmatmul.f32.gmra.mxu2 %v3928_v63  ;;  %v1439_v49 = vadd.f32 %v1438_v23, %v1374_v62  ;;  %v1386_v29 = vadd.f32 %v4048_v19, %v1317_v32 }
 0x281   : > { %v1446_v30 = vpop.f32.mrf.mxu2  ;;  %v1471_v37 = vpop.f32.mrf.mxu1 }
 0x282   : > { %v4063_v58 = vadd.f32 %v1471_v37, %v1419_v20  ;;  %v1641_v63 = vpop.f32.mrf.mxu3  ;;  %v1447_v14 = vadd.f32 %v1446_v30, %v1386_v29 }
 0x289   : > { %v1475_v57 = vpop.f32.mrf.mxu1  ;;  %v1528_v54 = vpop.f32.mrf.mxu2 }
 0x28a   : > { %v4065_v28 = vadd.f32 %v1475_v57, %v1423_v8  ;;  %v4067_v53 = vadd.f32 %v1625_v25, %v1528_v54  ;;  %v1645_v11 = vpop.f32.mrf.mxu3  ;;  %v1683_v25 = vpop.f32.mrf.mxu0 }
 0x28c   : > { %v1684_v29 = vadd.f32 %v1683_v25, %v4067_v53 }
 0x291   : > { %v1479_v39 = vpop.f32.mrf.mxu1  ;;  %v1536_v47 = vpop.f32.mrf.mxu2 }
 0x292   : > { %v1480_v35 = vadd.f32 %v1479_v39, %v1427_v52  ;;  %v4070_v24 = vadd.f32 %v1629_v38, %v1536_v47  ;;  %v1649_v15 = vpop.f32.mrf.mxu3  ;;  %v4079_v42 = vpop.f32.mrf.mxu0 }
 0x294   : > { %1916 = vperm.xlu1 %3119, %v1480_v35  }
 0x299   : > { %v1483_v31 = vpop.f32.mrf.mxu1  ;;  %v1544_v20 = vpop.f32.mrf.mxu2 }
 0x29a   : > { %v1484_v12 = vadd.f32 %v1483_v31, %v1431_v45  ;;  %v4073_v48 = vadd.f32 %v1633_v36, %v1544_v20  ;;  %v1653_v9 = vpop.f32.mrf.mxu3  ;;  %v1693_v41 = vpop.f32.mrf.mxu0 }
 0x29c   : > { %1921 = vperm.xlu0 %3120, %v1484_v12  }
 0x2a1   : > { %v1487_v8 = vpop.f32.mrf.mxu1  ;;  %v1552_v21 = vpop.f32.mrf.mxu2 }
 0x2a2   : > { %v1488_v22 = vadd.f32 %v1487_v8, %v1435_v44  ;;  %v1638_v59 = vadd.f32 %v1637_v61, %v1552_v21  ;;  %v1873_v23 = vpop.f32.mrf.mxu3  ;;  %v1698_v19 = vpop.f32.mrf.mxu0 }
 0x2a4   : > { %1926 = vperm.xlu1 %3119, %v1488_v22   ;;  %v1699_v21 = vadd.f32 %v1698_v19, %v1638_v59 }
 0x2a9   : > { %v1491_v56 = vpop.f32.mrf.mxu1  ;;  %v1560_v17 = vpop.f32.mrf.mxu2 }
 0x2aa   : > { %v1492_v51 = vadd.f32 %v1491_v56, %v1439_v49  ;;  %v4081_v13 = vpop.f32.mrf.mxu3  ;;  %v1703_v52 = vpop.f32.mrf.mxu0  ;;  %v1642_v35 = vadd.f32 %v1641_v63, %v1560_v17 }
 0x2ac   : > { %1931 = vperm.xlu2 %3121, %v1492_v51   ;;  %v1704_v45 = vadd.f32 %v1703_v52, %v1642_v35 }
 0x2b1   : > { %v1495_v60 = vpop.f32.mrf.mxu1  ;;  %v1568_v34 = vpop.f32.mrf.mxu2 }
 0x2b2   : > { %v1496_v26 = vadd.f32 %v1495_v60, %v1443_v50  ;;  %v4083_v57 = vpop.f32.mrf.mxu3  ;;  %v1708_v31 = vpop.f32.mrf.mxu0  ;;  %v1646_v44 = vadd.f32 %v1645_v11, %v1568_v34 }
 0x2b4   : > { %1936 = vperm.xlu1 %3119, %v1496_v26   ;;  %v1709_v49 = vadd.f32 %v1708_v31, %v1646_v44 }
 0x2b9   : > { %v1499_v38 = vpop.f32.mrf.mxu1  ;;  %v1576_v43 = vpop.f32.mrf.mxu2 }
 0x2ba   : > { %v1500_v16 = vadd.f32 %v1499_v38, %v1447_v14  ;;  %v1885_v32 = vpop.f32.mrf.mxu3  ;;  %v1713_v50 = vpop.f32.mrf.mxu0  ;;  %v1650_v26 = vadd.f32 %v1649_v15, %v1576_v43 }
 0x2bc   : > { %1941 = vperm.xlu2 %3121, %v1500_v16   ;;  %v1714_v16 = vadd.f32 %v1713_v50, %v1650_v26  ;;  %v2051_v50 = vld [vmem:[%s4456_s4 + $0xb8] sm:$0xff] }
 0x2c1   : > { %v1584_v55 = vpop.f32.mrf.mxu2  ;;  %v1745_v36 = vpop.f32.mrf.mxu1 }
 0x2c2   : > { %v1889_v27 = vpop.f32.mrf.mxu3  ;;  %v1746_v11 = vadd.f32 %v1745_v36, %v1684_v29  ;;  %v1654_v52 = vadd.f32 %v1653_v9, %v1584_v55  ;;  %v2029_v36 = vld [vmem:[%s4456_s4 + $0x8] sm:$0xff]  ;;  %v1694_v55 = vadd.f32 %v1693_v41, %v4073_v48  ;;  %v2035_v48 = vld [vmem:[%s4456_s4 + $0x38] sm:$0xff]  ;;  %v2028_v41 = vld [vmem:[%s4456_s4] sm:$0xff] }
 0x2c9   : > { %v1751_v18 = vpop.f32.mrf.mxu1  ;;  %v1820_v37 = vpop.f32.mrf.mxu2 }
 0x2ca   : > { %v1893_v62 = vpop.f32.mrf.mxu3  ;;  %v1821_v34 = vadd.f32 %v1820_v37, %v1746_v11  ;;  %v1689_v37 = vadd.f32 %v4079_v42, %v4070_v24  ;;  %v2033_v42 = vld [vmem:[%s4456_s4 + $0x28] sm:$0xff] }
 0x2cc   : > { %v1874_v35 = vadd.f32 %v1873_v23, %v1821_v34  ;;  %v1752_v23 = vadd.f32 %v1751_v18, %v1689_v37  ;;  %v2036_v18 = vld [vmem:[%s4456_s4 + $0x40] sm:$0xff] }
 0x2d1   : > { %v1757_v54 = vpop.f32.mrf.mxu1  ;;  %v4085_v61 = vpop.f32.mrf.mxu2 }
 0x2d2   : > { %v1897_v59 = vpop.f32.mrf.mxu3  ;;  %v1758_v31 = vadd.f32 %v1757_v54, %v1694_v55  ;;  %v2039_v54 = vld [vmem:[%s4456_s4 + $0x58] sm:$0xff] }
 0x2d9   : > { %v1763_v30 = vpop.f32.mrf.mxu1  ;;  %v1828_v40 = vpop.f32.mrf.mxu2 }
 0x2da   : > { %v1764_v56 = vadd.f32 %v1763_v30, %v1699_v21  ;;  %v2047_v21 = vld [vmem:[%s4456_s4 + $0x98] sm:$0xff] }
 0x2e1   : > { %v1769_v39 = vpop.f32.mrf.mxu1  ;;  %v1832_v47 = vpop.f32.mrf.mxu2 }
 0x2e2   : > { %v1770_v20 = vadd.f32 %v1769_v39, %v1704_v45  ;;  %v1833_v51 = vadd.f32 %v1832_v47, %v1764_v56  ;;  %v1718_v47 = vpop.f32.mrf.mxu0  ;;  %v2040_v56 = vld [vmem:[%s4456_s4 + $0x60] sm:$0xff] }
 0x2e3   : > { %v1719_v43 = vadd.f32 %v1718_v47, %v1654_v52  ;;  %v3131_v52 = vld [vmem:[%s3378_s19 + $0x30] sm:$0xff] }
 0x2e4   : > { %v1886_v14 = vadd.f32 %v1885_v32, %v1833_v51  ;;  %v1901_v32 = vpop.f32.mrf.mxu3  ;;  %v2048_v51 = vld [vmem:[%s4456_s4 + $0xa0] sm:$0xff] }
 0x2e9   : > { %v1775_v12 = vpop.f32.mrf.mxu1  ;;  %v1836_v10 = vpop.f32.mrf.mxu2 }
 0x2ea   : > { %v1837_v8 = vadd.f32 %v1836_v10, %v1770_v20  ;;  %v1776_v46 = vadd.f32 %v1775_v12, %v1709_v49  ;;  %v1825_v20 = vadd.f32 %v4085_v61, %v1752_v23  ;;  %v1829_v12 = vadd.f32 %v1828_v40, %v1758_v31  ;;  %v2032_v10 = vld [vmem:[%s4456_s4 + $0x20] sm:$0xff]  ;;  %v2034_v40 = vld [vmem:[%s4456_s4 + $0x30] sm:$0xff]  ;;  %v3135_v23 = vld [vmem:[%s3378_s19 + $0x18] sm:$0xff] }
 0x2eb   : > { %v2044_v61 = vld [vmem:[%s4456_s4 + $0x80] sm:$0xff]  ;;  %v2050_v49 = vld [vmem:[%s4456_s4 + $0xb0] sm:$0xff] }
 0x2ec   : > { %v1890_v22 = vadd.f32 %v1889_v27, %v1837_v8  ;;  %v1878_v44 = vadd.f32 %v4081_v13, %v1825_v20  ;;  %v1882_v24 = vadd.f32 %v4083_v57, %v1829_v12  ;;  %v2038_v13 = vld [vmem:[%s4456_s4 + $0x50] sm:$0xff]  ;;  %v2031_v57 = vld [vmem:[%s4456_s4 + $0x18] sm:$0xff] }
 0x2ed   : > { %v2042_v8 = vld [vmem:[%s4456_s4 + $0x70] sm:$0xff] }
 0x2ee   : > { %1974 = vperm.xlu1 %3119, %v1890_v22   ;;  %v2037_v22 = vld [vmem:[%s4456_s4 + $0x48] sm:$0xff] }
 0x2f1   : > { %v1840_v60 = vpop.f32.mrf.mxu2  ;;  %v1781_v17 = vpop.f32.mrf.mxu1 }
 0x2f2   : > { %v1841_v63 = vadd.f32 %v1840_v60, %v1776_v46  ;;  %v1782_v19 = vadd.f32 %v1781_v17, %v1714_v16  ;;  %v2043_v46 = vld [vmem:[%s4456_s4 + $0x78] sm:$0xff]  ;;  %v2046_v60 = vld [vmem:[%s4456_s4 + $0x90] sm:$0xff]  ;;  %v2049_v17 = vld [vmem:[%s4456_s4 + $0xa8] sm:$0xff] }
 0x2f4   : > { %v1894_v38 = vadd.f32 %v1893_v62, %v1841_v63  ;;  %v2045_v62 = vld [vmem:[%s4456_s4 + $0x88] sm:$0xff] }
 0x2f6   : > { %1979 = vperm.xlu2 %3121, %v1894_v38   ;;  %1969 = vperm.xlu1 %3119, %v1886_v14  }
 0x2f9   : > { %v1844_v30 = vpop.f32.mrf.mxu2  ;;  %v1787_v15 = vpop.f32.mrf.mxu1 }
 0x2fa   : > { %v1845_v39 = vadd.f32 %v1844_v30, %v1782_v19  ;;  %v1788_v53 = vadd.f32 %v1787_v15, %v1719_v43  ;;  %v3130_v19 = vld [vmem:[%s3378_s19 + $0x38] sm:$0xff] }
 0x2fc   : > { %v1898_v27 = vadd.f32 %v1897_v59, %v1845_v39 }
 0x2fe   : > { %1984 = vperm.xlu0 %3120, %v1898_v27   ;;  %1954 = vperm.xlu1 %3119, %v1874_v35   ;;  %v3132_v35 = vld [vmem:[%s3378_s19 + $0x20] sm:$0xff] }
 0x301   : > { %v1848_v25 = vpop.f32.mrf.mxu2 }
 0x302   : > { %v1849_v45 = vadd.f32 %v1848_v25, %v1788_v53  ;;  %v3133_v25 = vld [vmem:[%s3378_s19 + $0x28] sm:$0xff] }
 0x304   : > { %v1902_v9 = vadd.f32 %v1901_v32, %v1849_v45 }
 0x306   : > { %1906 = vperm.xlu0 %3120, %v4063_v58   ;;  %2059 = vperm.xlu1 %3119, %v2029_v36   ;;  %v2030_v58 = vld [vmem:[%s4456_s4 + $0x10] sm:$0xff]  ;;  %v1932_v26 = vpop.permute.xlu2 %1931  ;;  %v1917_v63 = vpop.permute.xlu1 %1916 }
 0x307   : > { %1989 = vperm.xlu2 %3121, %v1902_v9   ;;  %v1949_v32 = vsub.f32 %v3133_v25, %v1932_v26  ;;  %v3134_v9 = vld [vmem:[%s3378_s19 + $0x10] sm:$0xff] }
 0x308   : > { %v1946_v55 = vsub.f32 %v3134_v9, %v1917_v63 }
 0x30e   : > { %1959 = vperm.xlu0 %3120, %v1878_v44   ;;  %2074 = vperm.xlu1 %3119, %v2032_v10   ;;  %v1922_v11 = vpop.permute.xlu0 %1921 }
 0x30f   : > { %1964 = vperm.xlu2 %3121, %v1882_v24   ;;  %v1947_v31 = vsub.f32 %v3135_v23, %v1922_v11 }
 0x316   : > { %2064 = vperm.xlu0 %3120, %v2030_v58   ;;  %2089 = vperm.xlu1 %3119, %v2035_v48   ;;  %v1942_v29 = vpop.permute.xlu2 %1941  ;;  %v1927_v14 = vpop.permute.xlu1 %1926 }
 0x317   : > { %1911 = vperm.xlu2 %3121, %v4065_v28   ;;  %v2041_v28 = vld [vmem:[%s4456_s4 + $0x68] sm:$0xff]  ;;  %v1951_v30 = vsub.f32 %v3130_v19, %v1942_v29  ;;  %v1948_v27 = vsub.f32 %v3132_v35, %v1927_v14 }
 0x31e   : > { %2079 = vperm.xlu0 %3120, %v2033_v42   ;;  %2104 = vperm.xlu1 %3119, %v2038_v13   ;;  %v3136_v42 = vld [vmem:[%s3378_s19] sm:$0xff] }
 0x31f   : > { %2054 = vperm.xlu2 %3121, %v2028_v41   ;;  %v3137_v41 = vld [vmem:[%s3378_s19 + $0x8] sm:$0xff] }
 0x326   : > { %2094 = vperm.xlu0 %3120, %v2036_v18   ;;  %2119 = vperm.xlu1 %3119, %v2041_v28   ;;  %v1937_v16 = vpop.permute.xlu1 %1936 }
 0x327   : > { %2069 = vperm.xlu2 %3121, %v2031_v57   ;;  %v1950_v39 = vsub.f32 %v3131_v52, %v1937_v16  ;;  %v3023_v52 = vld [vmem:[%s4455_s3 + $0x50] sm:$0xff] }
 0x32e   : > { %2109 = vperm.xlu0 %3120, %v2039_v54   ;;  %2134 = vperm.xlu1 %3119, %v2044_v61  }
 0x32f   : > { %2084 = vperm.xlu2 %3121, %v2034_v40  }
 0x336   : > { %2124 = vperm.xlu0 %3120, %v2042_v8   ;;  %2149 = vperm.xlu1 %3119, %v2047_v21   ;;  %v3013_v8 = vld [vmem:[%s4455_s3] sm:$0xff]  ;;  %v3014_v21 = vld [vmem:[%s4455_s3 + $0x8] sm:$0xff] }
 0x337   : > { %2099 = vperm.xlu2 %3121, %v2037_v22   ;;  %v3015_v22 = vld [vmem:[%s4455_s3 + $0x10] sm:$0xff] }
 0x33e   : > { %2139 = vperm.xlu0 %3120, %v2045_v62   ;;  %2164 = vperm.xlu1 %3119, %v2050_v49   ;;  %v3016_v62 = vld [vmem:[%s4455_s3 + $0x18] sm:$0xff]  ;;  %v3017_v49 = vld [vmem:[%s4455_s3 + $0x20] sm:$0xff] }
 0x33f   : > { %2114 = vperm.xlu2 %3121, %v2040_v56   ;;  %v3018_v56 = vld [vmem:[%s4455_s3 + $0x28] sm:$0xff] }
 0x346   : > { %2154 = vperm.xlu0 %3120, %v2048_v51   ;;  %v3019_v51 = vld [vmem:[%s4455_s3 + $0x30] sm:$0xff] }
 0x347   : > { %2129 = vperm.xlu2 %3121, %v2043_v46   ;;  %v3020_v46 = vld [vmem:[%s4455_s3 + $0x38] sm:$0xff] }
 0x34e   : > { %2169 = vperm.xlu0 %3120, %v2051_v50   ;;  %v3021_v50 = vld [vmem:[%s4455_s3 + $0x40] sm:$0xff] }
 0x34f   : > { %2144 = vperm.xlu2 %3121, %v2046_v60  }
 0x350   : > { %v1980_v38 = vpop.permute.xlu2 %1979 }
 0x351   : > { %v1997_v20 = vmul.f32 %v1980_v38, %v1949_v32  ;;  %v3022_v38 = vld [vmem:[%s4455_s3 + $0x48] sm:$0xff] }
 0x357   : > { %2159 = vperm.xlu2 %3121, %v2049_v17  }
 0x360   : > { %v1975_v34 = vpop.permute.xlu1 %1974 }
 0x361   : > { %v1990_v59 = vpop.permute.xlu2 %1989  ;;  %v1996_v45 = vmul.f32 %v1975_v34, %v1948_v27 }
 0x362   : > { %v1999_v15 = vmul.f32 %v1990_v59, %v1951_v30 }
 0x363   : > { %v2002_v12 = vpack.c.bf16 %v1997_v20, %v1996_v45 }
 0x368   : > { %v1970_v37 = vpop.permute.xlu1 %1969 }
 0x369   : > { %v1965_v53 = vpop.permute.xlu2 %1964  ;;  %v1995_v10 = vmul.f32 %v1970_v37, %v1947_v31 }
 0x36a   : > { %v1994_v44 = vmul.f32 %v1965_v53, %v1946_v55  ;;  %v3024_v53 = vld [vmem:[%s4455_s3 + $0x58] sm:$0xff] }
 0x36c   : > { %v2001_v58 = vpack.c.bf16 %v1995_v10, %v1994_v44 }
 0x370   : > { %v1985_v47 = vpop.permute.xlu0 %1984  ;;  %v1955_v28 = vpop.permute.xlu1 %1954 }
 0x371   : > { %v1998_v43 = vmul.f32 %v1985_v47, %v1950_v39  ;;  %v1912_v48 = vpop.permute.xlu2 %1911 }
 0x372   : > { %v1945_v18 = vsub.f32 %v3137_v41, %v1912_v48 }
 0x373   : > { %v2003_v36 = vpack.c.bf16 %v1999_v15, %v1998_v43 }
 0x375   : > { %2272 = vmatpush.bf16.msra.mxu0 %v2003_v36 }
 0x378   : > { %v1907_v24 = vpop.permute.xlu0 %1906  ;;  %v2060_v17 = vpop.permute.xlu1 %2059 }
 0x379   : > { %2273 = vmatpush.bf16.msra.mxu0 %v2002_v12  ;;  %v1944_v13 = vsub.f32 %v3136_v42, %v1907_v24  ;;  %v2055_v60 = vpop.permute.xlu2 %2054 }
 0x37b   : > { %v1992_v54 = vmul.f32 %v1955_v28, %v1944_v13 }
 0x37d   : > { %2274 = vmatpush.bf16.msra.mxu0 %v2001_v58 }
 0x380   : > { %v1960_v57 = vpop.permute.xlu0 %1959  ;;  %v2075_v39 = vpop.permute.xlu1 %2074 }
 0x381   : > { %v1993_v61 = vmul.f32 %v1960_v57, %v1945_v18  ;;  %v2070_v34 = vpop.permute.xlu2 %2069 }
 0x383   : > { %v2000_v40 = vpack.c.bf16 %v1993_v61, %v1992_v54 }
 0x385   : > { %2275 = vmatpush.bf16.msra.mxu0 %v2000_v40 }
 0x388   : > { %2958 = vmatmul.msk.bf16.vlgmr.msra.gmra.mxu0 %vm338_vm0, %v3013_v8  ;;  %v2065_v16 = vpop.permute.xlu0 %2064  ;;  %v2090_v36 = vpop.permute.xlu1 %2089 }
 0x389   : > { %v2085_v25 = vpop.permute.xlu2 %2084 }
 0x390   : > { %v2080_v27 = vpop.permute.xlu0 %2079  ;;  %v2105_v44 = vpop.permute.xlu1 %2104 }
 0x391   : > { %v2100_v20 = vpop.permute.xlu2 %2099 }
 0x398   : > { %2959 = vmatmul.msk.bf16.gmra.mxu0 %vm338_vm0, %v3014_v21  ;;  %v2095_v55 = vpop.permute.xlu0 %2094  ;;  %v2120_v57 = vpop.permute.xlu1 %2119 }
 0x399   : > { %v2115_v41 = vpop.permute.xlu2 %2114 }
 0x3a0   : > { %v2110_v48 = vpop.permute.xlu0 %2109 }
 0x3a8   : > { %2960 = vmatmul.msk.bf16.gmra.mxu0 %vm338_vm0, %v3015_v22  ;;  %v2125_v40 = vpop.permute.xlu0 %2124  ;;  %v2130_v22 = vpop.permute.xlu2 %2129 }
 0x3b8   : > { %2961 = vmatmul.msk.bf16.gmra.mxu0 %vm338_vm0, %v3016_v62 }
 0x3c8   : > { %2962 = vmatmul.msk.bf16.gmra.mxu0 %vm338_vm0, %v3017_v49 }
 0x3d8   : > { %2963 = vmatmul.msk.bf16.gmra.mxu0 %vm338_vm0, %v3018_v56  ;;  %v2135_v56 = vpop.permute.xlu1 %2134 }
 0x3e8   : > { %2964 = vmatmul.msk.bf16.gmra.mxu0 %vm338_vm0, %v3019_v51 }
 0x3f8   : > { %2965 = vmatmul.msk.bf16.gmra.mxu0 %vm338_vm0, %v3020_v46 }
 0x405   : > { %v2277_v26 = vpop.f32.mrf.mxu0 }
 0x406   : > { %v2278_v63 = vadd.f32 %v2277_v26, %v2055_v60 }
 0x408   : > { %2337 = vst [vmem:[#allocation2] sm:$0xff] %v2278_v63  ;;  %2966 = vmatmul.msk.bf16.gmra.mxu0 %vm338_vm0, %v3021_v50  ;;  %v2140_v50 = vpop.permute.xlu0 %2139  ;;  %v2145_v63 = vpop.permute.xlu2 %2144 }
 0x40d   : > { %v2279_v29 = vpop.f32.mrf.mxu0 }
 0x40e   : > { %v2280_v14 = vadd.f32 %v2279_v29, %v2060_v17 }
 0x410   : > { %2338 = vst [vmem:[#allocation2 + $0x8] sm:$0xff] %v2280_v14  ;;  %v2150_v14 = vpop.permute.xlu1 %2149 }
 0x415   : > { %v2282_v11 = vpop.f32.mrf.mxu0 }
 0x416   : > { %v2283_v59 = vadd.f32 %v2282_v11, %v2065_v16  ;;  %v2155_v11 = vpop.permute.xlu0 %2154 }
 0x418   : > { %2339 = vst [vmem:[#allocation2 + $0x10] sm:$0xff] %v2283_v59  ;;  %2967 = vmatmul.msk.bf16.gmra.mxu0 %vm338_vm0, %v3022_v38 }
 0x41d   : > { %v2284_v19 = vpop.f32.mrf.mxu0 }
 0x41e   : > { %v2285_v30 = vadd.f32 %v2284_v19, %v2070_v34  ;;  %v2160_v19 = vpop.permute.xlu2 %2159 }
 0x420   : > { %2340 = vst [vmem:[#allocation2 + $0x18] sm:$0xff] %v2285_v30 }
 0x425   : > { %v2287_v47 = vpop.f32.mrf.mxu0 }
 0x426   : > { %v2288_v35 = vadd.f32 %v2287_v47, %v2075_v39  ;;  %v2165_v39 = vpop.permute.xlu1 %2164 }
 0x428   : > { %2341 = vst [vmem:[#allocation2 + $0x20] sm:$0xff] %v2288_v35  ;;  %2968 = vmatmul.msk.bf16.gmra.mxu0 %vm338_vm0, %v3023_v52 }
 0x42d   : > { %v2289_v15 = vpop.f32.mrf.mxu0 }
 0x42e   : > { %v2290_v43 = vadd.f32 %v2289_v15, %v2080_v27  ;;  %v2170_v27 = vpop.permute.xlu0 %2169 }
 0x430   : > { %2342 = vst [vmem:[#allocation2 + $0x28] sm:$0xff] %v2290_v43 }
 0x435   : > { %v2292_v32 = vpop.f32.mrf.mxu0 }
 0x436   : > { %v2293_v45 = vadd.f32 %v2292_v32, %v2085_v25 }
 0x438   : > { %2343 = vst [vmem:[#allocation2 + $0x30] sm:$0xff] %v2293_v45  ;;  %2969 = vmatmul.msk.bf16.gmra.mxu0 %vm338_vm0, %v3024_v53 }
 0x43d   : > { %v2294_v37 = vpop.f32.mrf.mxu0 }
 0x43e   : > { %v2295_v9 = vadd.f32 %v2294_v37, %v2090_v36 }
 0x440   : > { %2344 = vst [vmem:[#allocation2 + $0x38] sm:$0xff] %v2295_v9 }
 0x445   : > { %v2297_v23 = vpop.f32.mrf.mxu0 }
 0x446   : > { %v2298_v31 = vadd.f32 %v2297_v23, %v2095_v55 }
 0x448   : > { %2345 = vst [vmem:[#allocation2 + $0x40] sm:$0xff] %v2298_v31 }
 0x44d   : > { %v2299_v12 = vpop.f32.mrf.mxu0 }
 0x44e   : > { %v2300_v10 = vadd.f32 %v2299_v12, %v2100_v20 }
 0x450   : > { %2346 = vst [vmem:[#allocation2 + $0x48] sm:$0xff] %v2300_v10 }
 0x455   : > { %v2302_v24 = vpop.f32.mrf.mxu0 }
 0x456   : > { %v2303_v58 = vadd.f32 %v2302_v24, %v2105_v44 }
 0x458   : > { %2347 = vst [vmem:[#allocation2 + $0x50] sm:$0xff] %v2303_v58 }
 0x45d   : > { %v2304_v42 = vpop.f32.mrf.mxu0 }
 0x45e   : > { %v2305_v13 = vadd.f32 %v2304_v42, %v2110_v48 }
 0x460   : > { %2348 = vst [vmem:[#allocation2 + $0x58] sm:$0xff] %v2305_v13 }
 0x465   : > { %v2307_v18 = vpop.f32.mrf.mxu0 }
 0x466   : > { %v2308_v28 = vadd.f32 %v2307_v18, %v2115_v41 }
 0x468   : > { %2349 = vst [vmem:[#allocation2 + $0x60] sm:$0xff] %v2308_v28 }
 0x46d   : > { %v2309_v54 = vpop.f32.mrf.mxu0 }
 0x46e   : > { %v2310_v61 = vadd.f32 %v2309_v54, %v2120_v57 }
 0x470   : > { %2350 = vst [vmem:[#allocation2 + $0x68] sm:$0xff] %v2310_v61 }
 0x475   : > { %v2312_v8 = vpop.f32.mrf.mxu0 }
 0x476   : > { %v2313_v21 = vadd.f32 %v2312_v8, %v2125_v40 }
 0x478   : > { %2351 = vst [vmem:[#allocation2 + $0x70] sm:$0xff] %v2313_v21 }
 0x47d   : > { %v2314_v62 = vpop.f32.mrf.mxu0 }
 0x47e   : > { %v2315_v49 = vadd.f32 %v2314_v62, %v2130_v22 }
 0x480   : > { %2352 = vst [vmem:[#allocation2 + $0x78] sm:$0xff] %v2315_v49 }
 0x485   : > { %v2317_v51 = vpop.f32.mrf.mxu0 }
 0x486   : > { %v2318_v46 = vadd.f32 %v2317_v51, %v2135_v56 }
 0x488   : > { %2353 = vst [vmem:[#allocation2 + $0x80] sm:$0xff] %v2318_v46 }
 0x48d   : > { %v2319_v60 = vpop.f32.mrf.mxu0 }
 0x48e   : > { %v2320_v26 = vadd.f32 %v2319_v60, %v2140_v50 }
 0x490   : > { %2354 = vst [vmem:[#allocation2 + $0x88] sm:$0xff] %v2320_v26 }
 0x495   : > { %v2322_v17 = vpop.f32.mrf.mxu0 }
 0x496   : > { %v2323_v29 = vadd.f32 %v2322_v17, %v2145_v63 }
 0x498   : > { %2355 = vst [vmem:[#allocation2 + $0x90] sm:$0xff] %v2323_v29 }
 0x49d   : > { %v2324_v38 = vpop.f32.mrf.mxu0 }
 0x49e   : > { %v2325_v16 = vadd.f32 %v2324_v38, %v2150_v14 }
 0x4a0   : > { %2356 = vst [vmem:[#allocation2 + $0x98] sm:$0xff] %v2325_v16 }
 0x4a5   : > { %v2327_v59 = vpop.f32.mrf.mxu0 }
 0x4a6   : > { %v2328_v34 = vadd.f32 %v2327_v59, %v2155_v11 }
 0x4a8   : > { %2357 = vst [vmem:[#allocation2 + $0xa0] sm:$0xff] %v2328_v34 }
 0x4ad   : > { %v2329_v30 = vpop.f32.mrf.mxu0 }
 0x4ae   : > { %v2330_v52 = vadd.f32 %v2329_v30, %v2160_v19 }
 0x4b0   : > { %2358 = vst [vmem:[#allocation2 + $0xa8] sm:$0xff] %v2330_v52 }
 0x4b5   : > { %v2332_v47 = vpop.f32.mrf.mxu0 }
 0x4b6   : > { %v2333_v35 = vadd.f32 %v2332_v47, %v2165_v39 }
 0x4b8   : > { %2359 = vst [vmem:[#allocation2 + $0xb0] sm:$0xff] %v2333_v35 }
 0x4bd   : > { %v2334_v15 = vpop.f32.mrf.mxu0 }
 0x4be   : > { %v2335_v43 = vadd.f32 %v2334_v15, %v2170_v27 }
 0x4c0   : > { %2360 = vst [vmem:[#allocation2 + $0xb8] sm:$0xff] %v2335_v43 }
 0x4c1 LB: >> { %s2367_s16 = smul.u32 96, %s3275_s15  ;;  %s2986_s14 = sshll.u32 %s3275_s15, 5  ;;  %s3275_s15 = sphi %s4227_s15, %s2366_s15  }
 0x4c2   : >> { %s2652_s19 = scalar_lea.vmem [#allocation3], %s2986_s14  ;;  %s2366_s15 = sadd.s32 1, %s3275_s15  }
 0x4c3   : >> { %s4233_s17 = scalar_lea.vmem [#allocation2], %s2367_s16  ;;  %p2363_p11 = scmp.ge.s32.totalorder %s2366_s15, 2  }
 0x4c4   : > { %3203 = vset.pattern.permute.xlu1 (%p2363_p11), %v3277_v33  ;;  %3204 = vset.pattern.permute.xlu2 (%p2363_p11), %v3277_v33  ;;  %s3029_s18 = sshll.u32 (%p2363_p11), %s3341_s28, 6  ;;  %s2823_s23 = sshll.u32 (%p2363_p11), %s4225_s9, 4  ;;  %s2824_s23 = int_to_ptr.vmem [resolvable:$true] %s2823_s23 }
 0x4c5   : > { %s2822_s22 = scalar_lea.hbm (%p2363_p11), %s4459_s7, %s3029_s18  ;;  %s2811_s28 = scalar_lea.sflag (%p2363_p11), [#allocation5], %s269_s13 }
 0x4c6   : > { %s2825_s29 = sshll.u32 (%p2363_p11), %s2822_s22, 4  ;;  %s3225_s14 = scalar_lea.hbm (%p2363_p11), %s4459_s7, 128  ;;  %s2826_s29 = int_to_ptr.hbm [resolvable:$true] %s2825_s29 }
 0x4c7   : >> { %v2369_v53 = vld [vmem:[%s4233_s17] sm:$0xff]  ;;  %v2370_v25 = vld [vmem:[%s4233_s17 + $0x8] sm:$0xff]  ;;  %v2972_v45 = vld [vmem:[%s4233_s17 + $0x30] sm:$0xff]  ;;  %s3219_s8 = sshra.s32 (%p2363_p11), %s2826_s29, 4  ;;  %s3220_s8 = int_to_ptr.hbm [resolvable:$true] %s3219_s8 }
 0x4c8   : >> { %v2373_v32 = vpack.c.bf16 %v2370_v25, %v2369_v53  ;;  %v2973_v36 = vld [vmem:[%s4233_s17 + $0x38] sm:$0xff]  ;;  %v2970_v9 = vld [vmem:[%s4233_s17 + $0x20] sm:$0xff]  ;;  %v2971_v55 = vld [vmem:[%s4233_s17 + $0x28] sm:$0xff]  ;;  %s3221_s15 = scalar_lea.hbm (%p2363_p11), %s3220_s8, 64  ;;  %p3226_p1 = scmp.lt.s32.totalorder (%p2363_p11), %s3220_s8, %s4459_s7 }
 0x4c9   : >> { %v2382_v37 = vpack.c.bf16 %v2973_v36, %v2972_v45  ;;  %v2381_v23 = vpack.c.bf16 %v2971_v55, %v2970_v9  ;;  %v2371_v31 = vld [vmem:[%s4233_s17 + $0x10] sm:$0xff]  ;;  %v2372_v20 = vld [vmem:[%s4233_s17 + $0x18] sm:$0xff]  ;;  %p3222_p12 = scmp.ne.s32.totalorder (%p2363_p11), %s3220_s8, %s3221_s15  ;;  %p3227_p2 = scmp.lt.s32.totalorder (%p2363_p11), %s3225_s14, %s3221_s15 }
 0x4ca   : >> { %2391 = vxpose.xlu0.c.b16.start [1/2] (short) %v2373_v32, 128  ;;  %v2374_v12 = vpack.c.bf16 %v2372_v20, %v2371_v31 }
 0x4cb   : >> { %2437 = vmatpush.bf16.msra.mxu0 %v2382_v37  ;;  %3046 = vmatpush.bf16.msra.mxu2 %v2382_v37  ;;  %p3223_p13 = pnand (%p2363_p11), %p3222_p12, %p3358_p5  ;;  %p3228_p3 = por (%p2363_p11), %p3227_p2, %p3226_p1 }
 0x4cd   : > { %p3224_p0 = pneg (%p2363_p11), %p3223_p13 }
 0x4cf   : >> { %2438 = vmatpush.bf16.msra.mxu0 %v2381_v23  ;;  %3047 = vmatpush.bf16.msra.mxu2 %v2381_v23  ;;  %p3229_p4 = pnand (%p2363_p11), %p3228_p3, %p3224_p0 }
 0x4da   : >> { %2392 = vxpose.xlu0.c.b16.end [2/2] (short) %v2374_v12, 128 }
 0x541   : > { %3202 = vset.pattern.permute.xlu0 (%p2363_p11), %v3277_v33  ;;  %v2750_v33 = vld [vmem:[%s4458_s6 + $0x20] sm:$0xff] (%p2363_p11) }
 0x576   : >> { %v2399_v10 = vpop.trf.xlu0 }
 0x577   : >> { %2978 = vmatmul.msk.bf16.vlgmr.msra.gmra.mxu0 %vm1075_vm1, %v2399_v10 }
 0x586   : >> { %v2400_v44 = vpop.trf.xlu0 }
 0x587   : >> { %2979 = vmatmul.msk.bf16.gmra.mxu0 %vm1075_vm1, %v2400_v44 }
 0x596   : >> { %v2401_v24 = vpop.trf.xlu0 }
 0x597   : >> { %2980 = vmatmul.msk.bf16.gmra.mxu0 %vm1075_vm1, %v2401_v24 }
 0x5a6   : >> { %v2402_v58 = vpop.trf.xlu0 }
 0x5a7   : >> { %2981 = vmatmul.msk.bf16.gmra.mxu0 %vm1075_vm1, %v2402_v58 }
 0x5b6   : >> { %v2403_v48 = vpop.trf.xlu0 }
 0x5b7   : >> { %2982 = vmatmul.msk.bf16.vlgmr.msra.gmra.mxu2 %vm1075_vm1, %v2403_v48 }
 0x5c6   : >> { %v2404_v42 = vpop.trf.xlu0 }
 0x5c7   : >> { %2983 = vmatmul.msk.bf16.gmra.mxu2 %vm1075_vm1, %v2404_v42 }
 0x5d6   : >> { %v2405_v13 = vpop.trf.xlu0 }
 0x5d7   : >> { %2984 = vmatmul.msk.bf16.gmra.mxu2 %vm1075_vm1, %v2405_v13 }
 0x5e6   : >> { %v2406_v41 = vpop.trf.xlu0 }
 0x5e7   : >> { %2985 = vmatmul.msk.bf16.gmra.mxu2 %vm1075_vm1, %v2406_v41 }
 0x5f4   : >> { %v4251_v18 = vpop.f32.mrf.mxu0 }
 0x5fc   : >> { %v4256_v57 = vpop.f32.mrf.mxu0 }
 0x604   : >> { %v4260_v61 = vpop.f32.mrf.mxu0 }
 0x60c   : >> { %v4262_v21 = vpop.f32.mrf.mxu0 }
 0x614   : >> { %v4264_v62 = vpop.f32.mrf.mxu0 }
 0x61c   : >> { %v4266_v56 = vpop.f32.mrf.mxu0 }
 0x624   : >> { %v2455_v46 = vpop.f32.mrf.mxu0 }
 0x62c   : >> { %v4271_v60 = vpop.f32.mrf.mxu0 }
 0x63a   : >> { %v4253_v28 = vpop.f32.mrf.mxu2 }
 0x63b   : >> { %2496 = vmax.xlane.f32.xlu0 %v4253_v28 }
 0x642   : >> { %v4258_v54 = vpop.f32.mrf.mxu2 }
 0x64a   : >> { %v2465_v40 = vpop.f32.mrf.mxu2 }
 0x652   : >> { %v2467_v8 = vpop.f32.mrf.mxu2 }
 0x65a   : >> { %v2470_v22 = vpop.f32.mrf.mxu2 }
 0x65b   : >> { %2504 = vmax.xlane.f32.xlu2 %v2470_v22 }
 0x662   : >> { %v2472_v49 = vpop.f32.mrf.mxu2 }
 0x663   : >> { %2506 = vmax.xlane.f32.xlu2 %v2472_v49 }
 0x66a   : >> { %v2475_v51 = vpop.f32.mrf.mxu2 }
 0x66b   : >> { %2502 = vmax.xlane.f32.xlu2 %v2467_v8  ;;  %2508 = vmax.xlane.f32.xlu1 %v2475_v51 }
 0x672   : >> { %v2477_v50 = vpop.f32.mrf.mxu2 }
 0x673   : >> { %2492 = vmax.xlane.f32.xlu2 %v2455_v46  ;;  %2510 = vmax.xlane.f32.xlu1 %v2477_v50 }
 0x67b   : >> { %2488 = vmax.xlane.f32.xlu2 %v4264_v62  ;;  %2500 = vmax.xlane.f32.xlu1 %v2465_v40 }
 0x683   : >> { %2484 = vmax.xlane.f32.xlu2 %v4260_v61  ;;  %2498 = vmax.xlane.f32.xlu1 %v4258_v54 }
 0x68b   : >> { %2480 = vmax.xlane.f32.xlu2 %v4251_v18  ;;  %2494 = vmax.xlane.f32.xlu1 %v4271_v60 }
 0x693   : >> { %2490 = vmax.xlane.f32.xlu1 %v4266_v56 }
 0x69b   : >> { %2486 = vmax.xlane.f32.xlu1 %v4262_v21 }
 0x6a3   : >> { %2482 = vmax.xlane.f32.xlu1 %v4256_v57 }
 0x6ae   : >> { %v2497_v27 = vpop.xlane.xlu0 %2496 }
 0x6af   : >> { %v2520_v32 = vsub.f32 %v4253_v28, %v2497_v27 }
 0x6b1   : >> { %v2544_v37 = vmul.f32 1.442695, %v2520_v32 }
 0x6ce   : >> { %v2505_v26 = vpop.xlane.xlu2 %2504 }
 0x6cf   : >> { %v2524_v38 = vsub.f32 %v2470_v22, %v2505_v26 }
 0x6d1   : >> { %v2552_v11 = vmul.f32 1.442695, %v2524_v38 }
 0x6d6   : >> { %v2507_v63 = vpop.xlane.xlu2 %2506 }
 0x6d7   : >> { %v2525_v52 = vsub.f32 %v2472_v49, %v2507_v63 }
 0x6d9   : >> { %v2554_v47 = vmul.f32 1.442695, %v2525_v52 }
 0x6de   : >> { %v2509_v17 = vpop.xlane.xlu1 %2508  ;;  %v2503_v34 = vpop.xlane.xlu2 %2502 }
 0x6df   : >> { %v2526_v29 = vsub.f32 %v2475_v51, %v2509_v17  ;;  %v2523_v45 = vsub.f32 %v2467_v8, %v2503_v34 }
 0x6e1   : >> { %v2556_v14 = vmul.f32 1.442695, %v2526_v29  ;;  %v2550_v9 = vmul.f32 1.442695, %v2523_v45 }
 0x6e3   : >> { %3138 = vpow2.f32 %v2556_v14 }
 0x6e4   : >> { %3140 = vpow2.f32 %v2552_v11 }
 0x6e6   : >> { %v2511_v16 = vpop.xlane.xlu1 %2510  ;;  %v2493_v25 = vpop.xlane.xlu2 %2492 }
 0x6e7   : >> { %v2527_v59 = vsub.f32 %v2477_v50, %v2511_v16  ;;  %v2518_v31 = vsub.f32 %v2455_v46, %v2493_v25 }
 0x6e9   : >> { %v2558_v19 = vmul.f32 1.442695, %v2527_v59  ;;  %v4278_v30 = vpop.eup %3138  ;;  %v2540_v44 = vmul.f32 1.442695, %v2518_v31 }
 0x6ea   : >> { %2588 = vadd.xlane.f32.xlu2 %v4278_v30  ;;  %v4281_v15 = vpop.eup %3140 }
 0x6eb   : >> { %3142 = vpow2.f32 %v2558_v19 }
 0x6ec   : >> { %3144 = vpow2.f32 %v2554_v47 }
 0x6ee   : >> { %v2501_v39 = vpop.xlane.xlu1 %2500  ;;  %v2489_v20 = vpop.xlane.xlu2 %2488 }
 0x6ef   : >> { %v2522_v35 = vsub.f32 %v2465_v40, %v2501_v39  ;;  %v2516_v42 = vsub.f32 %v4264_v62, %v2489_v20 }
 0x6f1   : >> { %v2548_v43 = vmul.f32 1.442695, %v2522_v35  ;;  %v4283_v53 = vpop.eup %3142 }
 0x6f2   : >> { %2584 = vadd.xlane.f32.xlu2 %v4281_v15  ;;  %2590 = vadd.xlane.f32.xlu1 %v4283_v53  ;;  %v4288_v55 = vpop.eup %3144 }
 0x6f3   : >> { %3146 = vpow2.f32 %v2548_v43 }
 0x6f4   : >> { %3148 = vpow2.f32 %v2544_v37 }
 0x6f5   : >> { %3150 = vpow2.f32 %v2550_v9 }
 0x6f6   : >> { %v2499_v36 = vpop.xlane.xlu1 %2498  ;;  %3152 = vpow2.f32 %v2540_v44  ;;  %v2485_v41 = vpop.xlane.xlu2 %2484 }
 0x6f7   : >> { %v2521_v12 = vsub.f32 %v4258_v54, %v2499_v36  ;;  %v2536_v54 = vmul.f32 1.442695, %v2516_v42  ;;  %v2514_v49 = vsub.f32 %v4260_v61, %v2485_v41 }
 0x6f9   : >> { %v4290_v23 = vpop.eup %3146  ;;  %v2546_v24 = vmul.f32 1.442695, %v2521_v12  ;;  %v2532_v51 = vmul.f32 1.442695, %v2514_v49 }
 0x6fa   : >> { %2586 = vadd.xlane.f32.xlu1 %v4288_v55  ;;  %2580 = vadd.xlane.f32.xlu2 %v4290_v23  ;;  %v4295_v58 = vpop.eup %3148 }
 0x6fb   : >> { %v4297_v48 = vpop.eup %3150  ;;  %3154 = vpow2.f32 %v2546_v24 }
 0x6fc   : >> { %v4303_v8 = vpop.eup %3152  ;;  %3156 = vpow2.f32 %v2536_v54 }
 0x6fe   : >> { %v2495_v10 = vpop.xlane.xlu1 %2494  ;;  %v2481_v50 = vpop.xlane.xlu2 %2480 }
 0x6ff   : >> { %v2519_v13 = vsub.f32 %v4271_v60, %v2495_v10  ;;  %v2512_v17 = vsub.f32 %v4251_v18, %v2481_v50 }
 0x701   : >> { %v2542_v40 = vmul.f32 1.442695, %v2519_v13  ;;  %v4305_v22 = vpop.eup %3154  ;;  %v2528_v29 = vmul.f32 1.442695, %v2512_v17 }
 0x702   : >> { %2582 = vadd.xlane.f32.xlu1 %v4297_v48  ;;  %2576 = vadd.xlane.f32.xlu2 %v4295_v58  ;;  %v4311_v26 = vpop.eup %3156 }
 0x703   : >> { %3158 = vpow2.f32 %v2542_v40 }
 0x704   : >> { %3160 = vpow2.f32 %v2532_v51 }
 0x706   : >> { %v2491_v28 = vpop.xlane.xlu1 %2490 }
 0x707   : >> { %v2517_v62 = vsub.f32 %v4266_v56, %v2491_v28 }
 0x709   : >> { %v2538_v60 = vmul.f32 1.442695, %v2517_v62  ;;  %v4313_v63 = vpop.eup %3158 }
 0x70a   : >> { %2578 = vadd.xlane.f32.xlu1 %v4305_v22  ;;  %2572 = vadd.xlane.f32.xlu2 %v4303_v8  ;;  %v4319_v14 = vpop.eup %3160 }
 0x70b   : >> { %3162 = vpow2.f32 %v2538_v60 }
 0x70c   : >> { %3164 = vpow2.f32 %v2528_v29 }
 0x70e   : >> { %v2487_v46 = vpop.xlane.xlu1 %2486 }
 0x70f   : >> { %v2515_v61 = vsub.f32 %v4262_v21, %v2487_v46 }
 0x711   : >> { %v2534_v56 = vmul.f32 1.442695, %v2515_v61  ;;  %v4321_v16 = vpop.eup %3162 }
 0x712   : >> { %2574 = vadd.xlane.f32.xlu1 %v4313_v63  ;;  %2568 = vadd.xlane.f32.xlu2 %v4311_v26  ;;  %v4326_v59 = vpop.eup %3164 }
 0x713   : >> { %3166 = vpow2.f32 %v2534_v56 }
 0x716   : >> { %v2483_v38 = vpop.xlane.xlu1 %2482 }
 0x717   : >> { %v2513_v18 = vsub.f32 %v4256_v57, %v2483_v38 }
 0x719   : >> { %v2530_v11 = vmul.f32 1.442695, %v2513_v18  ;;  %v4328_v34 = vpop.eup %3166 }
 0x71a   : >> { %2570 = vadd.xlane.f32.xlu1 %v4321_v16  ;;  %2564 = vadd.xlane.f32.xlu2 %v4319_v14 }
 0x71b   : >> { %3168 = vpow2.f32 %v2530_v11 }
 0x721   : >> { %v4332_v21 = vpop.eup %3168 }
 0x722   : >> { %2566 = vadd.xlane.f32.xlu1 %v4328_v34  ;;  %2560 = vadd.xlane.f32.xlu2 %v4326_v59 }
 0x72a   : >> { %2562 = vadd.xlane.f32.xlu1 %v4332_v21 }
 0x73a   : > { %2776 = vperm.xlu2 (%p2363_p11), %3204, %v2750_v33  }
 0x75d   : >> { %v2589_v19 = vpop.xlane.xlu2 %2588 }
 0x75e   : >> { %3170 = vrcp.f32 %v2589_v19 }
 0x764   : >> { %v3171_v57 = vpop.eup %3170 }
 0x765   : >> { %v2585_v52 = vpop.xlane.xlu2 %2584  ;;  %v2591_v39 = vpop.xlane.xlu1 %2590  ;;  %v2622_v43 = vmul.f32 %v3171_v57, %v4278_v30 }
 0x766   : >> { %3172 = vrcp.f32 %v2591_v39 }
 0x767   : >> { %3174 = vrcp.f32 %v2585_v52 }
 0x76c   : >> { %v3173_v47 = vpop.eup %3172 }
 0x76d   : >> { %v2581_v35 = vpop.xlane.xlu2 %2580  ;;  %v2587_v27 = vpop.xlane.xlu1 %2586  ;;  %v2623_v25 = vmul.f32 %v3173_v47, %v4283_v53 }
 0x76e   : >> { %3176 = vrcp.f32 %v2587_v27  ;;  %v3175_v45 = vpop.eup %3174  ;;  %v2975_v27 = vld [vmem:[%s4233_s17 + $0x48] sm:$0xff] }
 0x76f   : >> { %v2631_v32 = vpack.c.bf16 %v2623_v25, %v2622_v43  ;;  %3178 = vrcp.f32 %v2581_v35  ;;  %v2620_v31 = vmul.f32 %v3175_v45, %v4281_v15  ;;  %v2974_v35 = vld [vmem:[%s4233_s17 + $0x40] sm:$0xff]  ;;  %v2977_v43 = vld [vmem:[%s4233_s17 + $0x58] sm:$0xff] }
 0x770   : >> { %v2389_v25 = vpack.c.bf16 %v2975_v27, %v2974_v35 }
 0x771   : >> { %2632 = vmatpush.bf16.xpose.msra.mxu1 %v2631_v32  ;;  %3048 = vmatpush.bf16.xpose.msra.mxu3 %v2631_v32 }
 0x774   : >> { %v3177_v36 = vpop.eup %3176 }
 0x775   : >> { %v2583_v37 = vpop.xlane.xlu1 %2582  ;;  %v2577_v9 = vpop.xlane.xlu2 %2576  ;;  %v2621_v20 = vmul.f32 %v3177_v36, %v4288_v55 }
 0x776   : >> { %3180 = vrcp.f32 %v2583_v37  ;;  %v3179_v10 = vpop.eup %3178 }
 0x777   : >> { %v2630_v12 = vpack.c.bf16 %v2621_v20, %v2620_v31  ;;  %3182 = vrcp.f32 %v2577_v9  ;;  %v2618_v24 = vmul.f32 %v3179_v10, %v4290_v23  ;;  %v2746_v10 = vld [vmem:[%s4458_s6] sm:$0xff] (%p2363_p11) }
 0x778   : > { %2756 = vperm.xlu0 (%p2363_p11), %3202, %v2746_v10  }
 0x779   : >> { %2633 = vmatpush.bf16.xpose.msra.mxu1 %v2630_v12  ;;  %3049 = vmatpush.bf16.xpose.msra.mxu3 %v2630_v12  ;;  %v2748_v12 = vld [vmem:[%s4458_s6 + $0x10] sm:$0xff] (%p2363_p11) }
 0x77a   : > { %2766 = vperm.xlu1 (%p2363_p11), %3203, %v2748_v12  }
 0x77c   : >> { %v3181_v30 = vpop.eup %3180 }
 0x77d   : >> { %v2579_v53 = vpop.xlane.xlu1 %2578  ;;  %v2573_v44 = vpop.xlane.xlu2 %2572  ;;  %v2619_v42 = vmul.f32 %v3181_v30, %v4297_v48 }
 0x77e   : >> { %3184 = vrcp.f32 %v2579_v53  ;;  %v3183_v41 = vpop.eup %3182 }
 0x77f   : >> { %v2629_v13 = vpack.c.bf16 %v2619_v42, %v2618_v24  ;;  %3186 = vrcp.f32 %v2573_v44  ;;  %v2616_v54 = vmul.f32 %v3183_v41, %v4295_v58  ;;  %v2749_v41 = vld [vmem:[%s4458_s6 + $0x18] sm:$0xff] (%p2363_p11) }
 0x781   : >> { %2634 = vmatpush.bf16.xpose.msra.mxu1 %v2629_v13  ;;  %3050 = vmatpush.bf16.xpose.msra.mxu3 %v2629_v13 }
 0x782   : > { %2771 = vperm.xlu1 (%p2363_p11), %3203, %v2749_v41  }
 0x784   : >> { %v3185_v15 = vpop.eup %3184 }
 0x785   : >> { %v2575_v55 = vpop.xlane.xlu1 %2574  ;;  %v2569_v28 = vpop.xlane.xlu2 %2568  ;;  %v2617_v40 = vmul.f32 %v3185_v15, %v4305_v22  ;;  %v2747_v15 = vld [vmem:[%s4458_s6 + $0x8] sm:$0xff] (%p2363_p11) }
 0x786   : >> { %3188 = vrcp.f32 %v2575_v55  ;;  %v3187_v62 = vpop.eup %3186  ;;  %2761 = vperm.xlu0 (%p2363_p11), %3202, %v2747_v15  }
 0x787   : >> { %v2628_v49 = vpack.c.bf16 %v2617_v40, %v2616_v54  ;;  %3190 = vrcp.f32 %v2569_v28  ;;  %v2614_v51 = vmul.f32 %v3187_v62, %v4303_v8  ;;  %v3025_v28 = vld [vmem:[%s4457_s5] sm:$0xff] (%p2363_p11)  ;;  %v3026_v54 = vld [vmem:[%s4457_s5 + $0x8] sm:$0xff] (%p2363_p11)  ;;  %v3028_v62 = vld [vmem:[%s4457_s5 + $0x18] sm:$0xff] (%p2363_p11) }
 0x788   : > { %v2751_v40 = vld [vmem:[%s4458_s6 + $0x28] sm:$0xff] (%p2363_p11) }
 0x789   : >> { %2635 = vmatpush.bf16.xpose.msra.mxu1 %v2628_v49  ;;  %3051 = vmatpush.bf16.xpose.msra.mxu3 %v2628_v49  ;;  %v3027_v49 = vld [vmem:[%s4457_s5 + $0x10] sm:$0xff] (%p2363_p11) }
 0x78a   : > { %2781 = vperm.xlu2 (%p2363_p11), %3204, %v2751_v40  }
 0x78c   : >> { %v3189_v23 = vpop.eup %3188 }
 0x78d   : >> { %v2571_v48 = vpop.xlane.xlu1 %2570  ;;  %v2615_v46 = vmul.f32 %v3189_v23, %v4313_v63  ;;  %v2565_v50 = vpop.xlane.xlu2 %2564  ;;  %v2753_v23 = vld [vmem:[%s4458_s6 + $0x38] sm:$0xff] (%p2363_p11) }
 0x78e   : >> { %3192 = vrcp.f32 %v2571_v48  ;;  %v3191_v17 = vpop.eup %3190  ;;  %v2752_v48 = vld [vmem:[%s4458_s6 + $0x30] sm:$0xff] (%p2363_p11)  ;;  %2791 = vperm.xlu1 (%p2363_p11), %3203, %v2753_v23  }
 0x78f   : >> { %v2627_v60 = vpack.c.bf16 %v2615_v46, %v2614_v51  ;;  %3194 = vrcp.f32 %v2565_v50  ;;  %v2612_v61 = vmul.f32 %v3191_v17, %v4311_v26  ;;  %2786 = vperm.xlu0 (%p2363_p11), %3202, %v2752_v48  }
 0x791   : >> { %2636 = vmatpush.bf16.xpose.msra.mxu1 %v2627_v60  ;;  %3052 = vmatpush.bf16.xpose.msra.mxu3 %v2627_v60 }
 0x794   : >> { %v3193_v58 = vpop.eup %3192 }
 0x795   : >> { %v2567_v22 = vpop.xlane.xlu1 %2566  ;;  %v2613_v29 = vmul.f32 %v3193_v58, %v4321_v16  ;;  %v2561_v38 = vpop.xlane.xlu2 %2560 }
 0x796   : >> { %3196 = vrcp.f32 %v2567_v22  ;;  %v3195_v18 = vpop.eup %3194 }
 0x797   : >> { %v2626_v56 = vpack.c.bf16 %v2613_v29, %v2612_v61  ;;  %3198 = vrcp.f32 %v2561_v38  ;;  %v2610_v11 = vmul.f32 %v3195_v18, %v4319_v14  ;;  %v2976_v14 = vld [vmem:[%s4233_s17 + $0x50] sm:$0xff] }
 0x799   : >> { %2637 = vmatpush.bf16.xpose.msra.mxu1 %v2626_v56  ;;  %3053 = vmatpush.bf16.xpose.msra.mxu3 %v2626_v56 }
 0x79c   : >> { %v3197_v8 = vpop.eup %3196 }
 0x79d   : >> { %v2563_v63 = vpop.xlane.xlu1 %2562  ;;  %v2611_v19 = vmul.f32 %v3197_v8, %v4328_v34  ;;  %v3199_v16 = vpop.eup %3198  ;;  %v2390_v34 = vpack.c.bf16 %v2977_v43, %v2976_v14 }
 0x79e   : >> { %3200 = vrcp.f32 %v2563_v63  ;;  %v2608_v39 = vmul.f32 %v3199_v16, %v4326_v59  ;;  %v2777_v38 = vpop.permute.xlu2 (%p2363_p11), %2776 }
 0x79f   : >> { %v2625_v26 = vpack.c.bf16 %v2611_v19, %v2610_v11 }
 0x7a1   : >> { %2638 = vmatpush.bf16.xpose.msra.mxu1 %v2625_v26  ;;  %3054 = vmatpush.bf16.xpose.msra.mxu3 %v2625_v26 }
 0x7a4   : >> { %v3201_v52 = vpop.eup %3200 }
 0x7a5   : >> { %v2609_v57 = vmul.f32 %v3201_v52, %v4332_v21 }
 0x7a7   : >> { %v2624_v47 = vpack.c.bf16 %v2609_v57, %v2608_v39 }
 0x7a9   : >> { %2639 = vmatpush.bf16.xpose.msra.mxu1 %v2624_v47  ;;  %3055 = vmatpush.bf16.xpose.msra.mxu3 %v2624_v47 }
 0x7b0   : >> { %2640 = vmatmul.bf16.vlgmr.msra.gmra.mxu1 %v2389_v25  ;;  %2645 = vmatmul.bf16.vlgmr.msra.gmra.mxu3 %v2390_v34 }
 0x7e4   : > { %v2782_v27 = vpop.permute.xlu2 (%p2363_p11), %2781 }
 0x7ea   : > { %v2757_v51 = vpop.permute.xlu0 (%p2363_p11), %2756 }
 0x7ec   : > { %v2767_v46 = vpop.permute.xlu1 (%p2363_p11), %2766 }
 0x7f4   : > { %v2772_v56 = vpop.permute.xlu1 (%p2363_p11), %2771 }
 0x7f8   : > { %v2762_v50 = vpop.permute.xlu0 (%p2363_p11), %2761 }
 0x800   : > { %v2792_v35 = vpop.permute.xlu1 (%p2363_p11), %2791 }
 0x82d   : >> { %v2641_v32 = vpop.f32.mrf.mxu1 }
 0x82e   : >> { %2653 = vst [vmem:[%s2652_s19] sm:$0xff] %v2641_v32 }
 0x833   : >> { %v2646_v45 = vpop.f32.mrf.mxu3 }
 0x834   : >> { %2655 = vst [vmem:[%s2652_s19 + $0x10] sm:$0xff] %v2646_v45 }
 0x835   : >> { %v2643_v59 = vpop.f32.mrf.mxu1 }
 0x836   : >> { %2654 = vst [vmem:[%s2652_s19 + $0x8] sm:$0xff] %v2643_v59 }
 0x838   : > { %2365 = sbr.rel (!%p2363_p11) target bundleno = 1217 (0x4c1), region = 94 }
 0x83b   : >> { %v2648_v21 = vpop.f32.mrf.mxu3 }
 0x83c   : >> { %2656 = vst [vmem:[%s2652_s19 + $0x18] sm:$0xff] %v2648_v21 }
 0x843   : > { %v2671_v36 = vld [vmem:[#allocation3 + $0x30] sm:$0xff]  ;;  %v2672_v37 = vld [vmem:[#allocation3 + $0x38] sm:$0xff]  ;;  %v2669_v9 = vld [vmem:[#allocation3 + $0x20] sm:$0xff] }
 0x844   : > { %v2676_v31 = vpack.c.bf16 %v2672_v37, %v2671_v36  ;;  %v2670_v20 = vld [vmem:[#allocation3 + $0x28] sm:$0xff]  ;;  %v2667_v53 = vld [vmem:[#allocation3 + $0x10] sm:$0xff]  ;;  %v2668_v44 = vld [vmem:[#allocation3 + $0x18] sm:$0xff] }
 0x845   : > { %v2675_v30 = vpack.c.bf16 %v2670_v20, %v2669_v9  ;;  %v2674_v24 = vpack.c.bf16 %v2668_v44, %v2667_v53  ;;  %v2665_v42 = vld [vmem:[#allocation3] sm:$0xff]  ;;  %v2666_v13 = vld [vmem:[#allocation3 + $0x8] sm:$0xff] }
 0x846   : > { %2713 = vmatpush.bf16.msra.mxu0 %v2676_v31  ;;  %3056 = vmatpush.bf16.msra.mxu1 %v2676_v31  ;;  %v2673_v55 = vpack.c.bf16 %v2666_v13, %v2665_v42 }
 0x847   : > { %3057 = vmatpush.bf16.msra.mxu2 %v2676_v31  ;;  %3058 = vmatpush.bf16.msra.mxu3 %v2676_v31 }
 0x84a   : > { %2714 = vmatpush.bf16.msra.mxu0 %v2675_v30  ;;  %3059 = vmatpush.bf16.msra.mxu1 %v2675_v30 }
 0x84b   : > { %3060 = vmatpush.bf16.msra.mxu2 %v2675_v30  ;;  %3061 = vmatpush.bf16.msra.mxu3 %v2675_v30 }
 0x84e   : > { %2715 = vmatpush.bf16.msra.mxu0 %v2674_v24  ;;  %3062 = vmatpush.bf16.msra.mxu1 %v2674_v24 }
 0x84f   : > { %3063 = vmatpush.bf16.msra.mxu2 %v2674_v24  ;;  %3064 = vmatpush.bf16.msra.mxu3 %v2674_v24 }
 0x852   : > { %2716 = vmatpush.bf16.msra.mxu0 %v2673_v55  ;;  %3065 = vmatpush.bf16.msra.mxu1 %v2673_v55 }
 0x853   : > { %3066 = vmatpush.bf16.msra.mxu2 %v2673_v55  ;;  %3067 = vmatpush.bf16.msra.mxu3 %v2673_v55 }
 0x855   : > { %3003 = vmatmul.msk.bf16.vlgmr.msra.gmra.mxu0 %vm338_vm0, %v3025_v28  ;;  %3004 = vmatmul.msk.bf16.vlgmr.msra.gmra.mxu1 %vm338_vm0, %v3026_v54 }
 0x856   : > { %3005 = vmatmul.msk.bf16.vlgmr.msra.gmra.mxu2 %vm338_vm0, %v3027_v49  ;;  %3006 = vmatmul.msk.bf16.vlgmr.msra.gmra.mxu3 %vm338_vm0, %v3028_v62 }
 0x8d2   : > { %v2718_v60 = vpop.f32.mrf.mxu0  ;;  %v2723_v17 = vpop.f32.mrf.mxu1 }
 0x8d3   : > { %v2738_v58 = vadd.f32 %v2718_v60, %v3408_v7  ;;  %v2740_v22 = vadd.f32 %v2723_v17, %v3399_v5  ;;  %v2787_v5 = vpop.permute.xlu0 %2786 }
 0x8d5   : > { %v2794_v61 = vadd.f32 %v2757_v51, %v2738_v58  ;;  %v2796_v29 = vadd.f32 %v2767_v46, %v2740_v22 }
 0x8d7   : > { %2802 = vst [vmem:[%s4225_s9] sm:$0xff] %v2794_v61 }
 0x8d8   : > { %2804 = vst [vmem:[%s4225_s9 + $0x10] sm:$0xff] %v2796_v29 }
 0x8d9   : > { %v2728_v18 = vpop.f32.mrf.mxu2  ;;  %v2733_v8 = vpop.f32.mrf.mxu3 }
 0x8da   : > { %v2742_v63 = vadd.f32 %v2728_v18, %v3396_v4  ;;  %v2744_v11 = vadd.f32 %v2733_v8, %v3393_v3  ;;  %v2720_v7 = vpop.f32.mrf.mxu0  ;;  %v2725_v19 = vpop.f32.mrf.mxu1 }
 0x8db   : > { %v2739_v26 = vadd.f32 %v2720_v7, %v3405_v6  ;;  %v2741_v16 = vadd.f32 %v2725_v19, %v3387_v2 }
 0x8dc   : > { %v2798_v52 = vadd.f32 %v2777_v38, %v2742_v63  ;;  %v2800_v39 = vadd.f32 %v2787_v5, %v2744_v11 }
 0x8dd   : > { %v2795_v57 = vadd.f32 %v2762_v50, %v2739_v26  ;;  %v2797_v47 = vadd.f32 %v2772_v56, %v2741_v16 }
 0x8de   : > { %2806 = vst [vmem:[%s4225_s9 + $0x20] sm:$0xff] %v2798_v52 }
 0x8df   : > { %2808 = vst [vmem:[%s4225_s9 + $0x30] sm:$0xff] %v2800_v39 }
 0x8e0   : > { %2803 = vst [vmem:[%s4225_s9 + $0x8] sm:$0xff] %v2795_v57 }
 0x8e1   : > { %2805 = vst [vmem:[%s4225_s9 + $0x18] sm:$0xff] %v2797_v47  ;;  %v2730_v3 = vpop.f32.mrf.mxu2  ;;  %v2735_v4 = vpop.f32.mrf.mxu3 }
 0x8e2   : > { %v2743_v2 = vadd.f32 %v2730_v3, %v3384_v1  ;;  %v2745_v6 = vadd.f32 %v2735_v4, %v3381_v0 }
 0x8e4   : > { %v2799_v14 = vadd.f32 %v2782_v27, %v2743_v2  ;;  %v2801_v43 = vadd.f32 %v2792_v35, %v2745_v6 }
 0x8e6   : > { %2807 = vst [vmem:[%s4225_s9 + $0x28] sm:$0xff] %v2799_v14 }
 0x8e7   : > { %2809 = vst [vmem:[%s4225_s9 + $0x38] sm:$0xff] %v2801_v43 }
 0x8e8   : > { %3232 = shalt.err (!%p3229_p4)
}
 0x8e9   : > { %s3278_s13 = smov 128   ;;  %s3279_s9 = smov 8  }
 0x8ea   : > { %3068 = dma.vmem_to_hbm [thread:$0]  (%p3358_p5), %s2824_s23, 1024, %s2826_s29, %s2811_s28, %s3278_s13, %s3278_s13, %s3279_s9  }
 0x8eb PF: > { %p3074_p7 = scmp.ge.s32.totalorder %s3271_s27, 2  ;;  %s2840_s20 = sand.u32 1, %s3259_s24  }
 0x8ec   : > { %s2841_s21 = scalar_lea.sflag [#allocation5], %s2840_s20 }
 0x8ed   : > { %p3071_p8 = pnand %p3074_p7, %p3362_p6 }
 0x8ef   : > { %p3072_p9 = pneg %p3071_p8 }
 0x8f1   : > { %3254 = dma.done.wait (%p3072_p9), %s2841_s21, 1024  }
 0x8f2   : > { %3256 = vsyncadd (%p3072_p9), %s2841_s21, 4294966272  ;;  %p17_p10 = scmp.ge.s32.totalorder %s3345_s30, 4   ;;  %s4462_s24 = smov %s3263_s25 }
 0x8f3   : > { %s4463_s25 = smov %s3267_s26  ;;  %s4464_s26 = smov %s3356_s10 }
 0x8f4   : > { %s4465_s27 = smov %s3345_s30  ;;  %19 = sbr.rel (!%p17_p10) target bundleno = 3 (0x3), region = 105 }
 0x8f9   :  { %2847 = vsyncpa [#allocation5], 1 }
 0x8fa   :  { %2849 = vsyncpa [#allocation5 + $0x1], 1 }

</bundles_post_ra>
